<compile_context>
chip_gen: v6e
topology: v6e:2x2x1
jax: 0.10.0
libtpu: 0.0.40
codegen_flags: <defaults>
</compile_context>

<pallas_src>
import math
import functools

import jax
import jax.numpy as jnp
from jax.experimental import pallas as pl
from jax.experimental.pallas import tpu as pltpu


# ------------------------- shared math helpers (kernel + reference) -------------------------

def _layernorm(v, w, b, eps=1e-5):
    mu = jnp.mean(v, axis=-1, keepdims=True)
    var = jnp.mean((v - mu) ** 2, axis=-1, keepdims=True)
    return (v - mu) * jax.lax.rsqrt(var + eps) * w + b


def _new_gelu(x):
    # x*x*x keeps the cubic on the VPU (the tanh already owns the EUP slot).
    return 0.5 * x * (1.0 + jnp.tanh(math.sqrt(2.0 / math.pi) *
                                     (x + 0.044715 * x * x * x)))


# ------------------------- Pallas kernel: all layers for one batch row -------------------------

def _core_kernel(x_ref, bias_ref, ln1w_ref, ln1b_ref, wqkv_ref, wo_ref,
                 ln2w_ref, ln2b_ref, wfc_ref, wpr_ref, out_ref, res_ref,
                 *, n_heads):
    """Grid is (batch_row, layer).  res_ref is the f32 residual-stream carry that stays
    resident in VMEM across the layer axis for a given batch row."""
    layer = pl.program_id(1)

    # Layer 0: load this row's embeddings into the resident f32 carry.
    @pl.when(layer == 0)
    def _():
        res_ref[...] = x_ref[0].astype(jnp.float32)

    cdt = wqkv_ref.dtype                       # MXU compute dtype (bf16)
    x = res_ref[...]                           # (T, C) f32 residual stream
    bias = bias_ref[0]                         # (1, T) additive key-padding bias
    T, C = x.shape
    D = C // n_heads

    # ---- attention sublayer: x + Attn(LN1(x)) ----
    h1 = _layernorm(x, ln1w_ref[0], ln1b_ref[0]).astype(cdt)
    # 1/sqrt(D) is already folded into the Q columns of wqkv (done once in the wrapper).
    qkv = jnp.dot(h1, wqkv_ref[0], preferred_element_type=jnp.float32)   # (T, 3C) f32
    wo = wo_ref[0]                                                       # (C, C)  bf16

    attn = jnp.zeros((T, C), jnp.float32)
    for h in range(n_heads):                   # static loop over heads, no concatenate
        qh = qkv[:, h * D:(h + 1) * D].astype(cdt)                       # (T, D)
        kh = qkv[:, C + h * D:C + (h + 1) * D].astype(cdt)               # (T, D)
        vh = qkv[:, 2 * C + h * D:2 * C + (h + 1) * D].astype(cdt)       # (T, D)

        # scores: contract directly on D (no kh.T -> no XLU transpose)
        s = jax.lax.dot_general(qh, kh, (((1,), (1,)), ((), ())),
                                preferred_element_type=jnp.float32)      # (T, T)
        s = s + bias                           # finite bias -> no NaN even if fully masked
        s = s - jnp.max(s, axis=-1, keepdims=True)
        p = jnp.exp(s)
        p = p * pl.reciprocal(jnp.sum(p, axis=-1, keepdims=True), approx=True)

        yh = jnp.dot(p.astype(cdt), vh, preferred_element_type=jnp.float32)   # (T, D)
        # fold this head's slice of the output projection; accumulate in f32
        attn = attn + jnp.dot(yh.astype(cdt), wo[h * D:(h + 1) * D, :],
                              preferred_element_type=jnp.float32)             # (T, C)
    x1 = x + attn

    # ---- feedforward sublayer: x1 + FFN(LN2(x1)) ----
    h2 = _layernorm(x1, ln2w_ref[0], ln2b_ref[0]).astype(cdt)
    f = jnp.dot(h2, wfc_ref[0], preferred_element_type=jnp.float32)      # (T, 4C) f32
    f = _new_gelu(f).astype(cdt)
    f = jnp.dot(f, wpr_ref[0], preferred_element_type=jnp.float32)       # (T, C)  f32
    x2 = x1 + f

    res_ref[...] = x2                          # carry to the next layer (stays in VMEM)

    @pl.when(layer == pl.num_programs(1) - 1)
    def _():
        out_ref[0] = x2.astype(out_ref.dtype)  # single HBM writeback per batch row


def _weight_index_map(b, layer):
    # all stacked weights are 3-D (n_layers, ..., ...); block changes only with the layer
    return (layer, 0, 0)


def run_core(x, attn_bias, stacked, n_heads, *, vmem_limit_bytes=48 * 1024 * 1024):
    """Run the full stack of transformer blocks in one Pallas kernel, grid=(B, L)."""
    B, T, C = x.shape
    ln1w, ln1b, wqkv, wo, ln2w, ln2b, wfc, wpr = stacked
    L = wqkv.shape[0]

    def wspec(arr):
        return pl.BlockSpec((1,) + arr.shape[1:], _weight_index_map)

    kernel = functools.partial(_core_kernel, n_heads=n_heads)
    return pl.pallas_call(
        kernel,
        out_shape=jax.ShapeDtypeStruct((B, T, C), x.dtype),
        grid=(B, L),
        in_specs=[
            pl.BlockSpec((1, T, C), lambda b, l: (b, 0, 0)),   # embeddings (bf16)
            pl.BlockSpec((1, 1, T), lambda b, l: (b, 0, 0)),   # additive key-padding bias
            wspec(ln1w), wspec(ln1b),                          # ln1 w, b   (L, 1, C) f32
            wspec(wqkv),                                       # c_attn     (L, C, 3C) bf16
            wspec(wo),                                         # attn c_proj(L, C, C)  bf16
            wspec(ln2w), wspec(ln2b),                          # ln2 w, b   (L, 1, C) f32
            wspec(wfc),                                        # ffn c_fc   (L, C, 4C) bf16
            wspec(wpr),                                        # ffn c_proj (L, 4C, C) bf16
        ],
        out_specs=pl.BlockSpec((1, T, C), lambda b, l: (b, 0, 0)),
        scratch_shapes=[pltpu.VMEM((T, C), jnp.float32)],      # f32 residual-stream carry
        compiler_params=pltpu.CompilerParams(
            # batch rows are fully independent -> megacore sharding on v7x;
            # the layer axis carries state -> "arbitrary".
            dimension_semantics=("parallel", "arbitrary"),
            vmem_limit_bytes=vmem_limit_bytes,
        ),
    )(x, attn_bias, ln1w, ln1b, wqkv, wo, ln2w, ln2b, wfc, wpr)


# ------------------------- parameter init (deterministic, synthetic) -------------------------

def init_params(key, *, vocab_size, block_size, n_embd, n_layers):
    C = n_embd
    std = 0.02
    proj_std = 0.02 / math.sqrt(2 * n_layers)   # matches c_proj.weight special init
    keys = jax.random.split(key, 3 + 4 * n_layers)

    tok_emb = std * jax.random.normal(keys[0], (vocab_size, C), jnp.float32)
    pos_emb = std * jax.random.normal(keys[1], (block_size, C), jnp.float32)
    seg_emb = std * jax.random.normal(keys[2], (3, C), jnp.float32)
    seg_emb = seg_emb.at[0].set(0.0)            # padding_idx=0 -> zero row

    blocks = []
    for l in range(n_layers):
        k0, k1, k2, k3 = keys[3 + 4 * l: 3 + 4 * (l + 1)]
        ln1w = jnp.ones((1, C), jnp.float32)
        ln1b = jnp.zeros((1, C), jnp.float32)
        ln2w = jnp.ones((1, C), jnp.float32)
        ln2b = jnp.zeros((1, C), jnp.float32)
        wqkv = std * jax.random.normal(k0, (C, 3 * C), jnp.float32)
        wo = proj_std * jax.random.normal(k1, (C, C), jnp.float32)
        wfc = std * jax.random.normal(k2, (C, 4 * C), jnp.float32)
        wpr = proj_std * jax.random.normal(k3, (4 * C, C), jnp.float32)
        blocks.append((ln1w, ln1b, wqkv, wo, ln2w, ln2b, wfc, wpr))

    return {"tok_emb": tok_emb, "pos_emb": pos_emb, "seg_emb": seg_emb, "blocks": blocks}


def stack_block_params(blocks, n_heads, compute_dtype):
    """Stack per-layer params along a leading layer axis; cast matmul weights to bf16 and
    fold 1/sqrt(D) into the Q columns of c_attn (a one-time weight transform)."""
    C = blocks[0][2].shape[0]
    D = C // n_heads
    scale = 1.0 / math.sqrt(D)

    ln1w = jnp.stack([b[0] for b in blocks])                          # (L, 1, C) f32
    ln1b = jnp.stack([b[1] for b in blocks])
    wqkv = jnp.stack([b[2] for b in blocks])                          # (L, C, 3C)
    wqkv = wqkv.at[:, :, :C].multiply(scale).astype(compute_dtype)
    wo = jnp.stack([b[3] for b in blocks]).astype(compute_dtype)      # (L, C, C)
    ln2w = jnp.stack([b[4] for b in blocks])
    ln2b = jnp.stack([b[5] for b in blocks])
    wfc = jnp.stack([b[6] for b in blocks]).astype(compute_dtype)     # (L, C, 4C)
    wpr = jnp.stack([b[7] for b in blocks]).astype(compute_dtype)     # (L, 4C, C)
    return ln1w, ln1b, wqkv, wo, ln2w, ln2b, wfc, wpr


# ------------------------- BERTCore forward -------------------------

def bert_core_forward(idx, segments, params, *, block_size, n_heads,
                      compute_dtype=jnp.bfloat16):
    # glue (embedding gathers + bias construction) in plain JAX; hot path in Pallas.
    idx_cond = idx[:, -block_size:]
    seg_cond = segments[:, -block_size:]
    B, T = idx_cond.shape

    # Additive key-padding bias, (B, 1, T): -1e30 where the key token id is 0, else 0.
    attn_bias = jnp.where(idx_cond == 0, -1e30, 0.0).astype(jnp.float32)[:, None, :]

    tok_emb = jnp.take(params["tok_emb"], idx_cond, axis=0)       # (B, T, C)
    pos_emb = params["pos_emb"][:T][None, :, :]                   # (1, T, C)
    seg_emb = jnp.take(params["seg_emb"], seg_cond, axis=0)       # (B, T, C)
    x = (tok_emb + pos_emb + seg_emb).astype(compute_dtype)

    stacked = stack_block_params(params["blocks"], n_heads, compute_dtype)
    return run_core(x, attn_bias, stacked, n_heads)


# ------------------------- pure-JAX f32 reference (sanity check) -------------------------

def _reference_forward(idx, segments, params, *, block_size, n_heads):
    idx_cond = idx[:, -block_size:]
    seg_cond = segments[:, -block_size:]
    B, T = idx_cond.shape
    bias = jnp.where(idx_cond == 0, -1e30, 0.0).astype(jnp.float32)[:, None, None, :]
    x = (jnp.take(params["tok_emb"], idx_cond, axis=0)
         + params["pos_emb"][:T][None]
         + jnp.take(params["seg_emb"], seg_cond, axis=0))
    for (ln1w, ln1b, wqkv, wo, ln2w, ln2b, wfc, wpr) in params["blocks"]:
        C = x.shape[-1]
        D = C // n_heads
        h1 = _layernorm(x, ln1w, ln1b)
        qkv = h1 @ wqkv
        q, k, v = qkv[..., :C], qkv[..., C:2 * C], qkv[..., 2 * C:]
        q = q.reshape(B, T, n_heads, D).transpose(0, 2, 1, 3)
        k = k.reshape(B, T, n_heads, D).transpose(0, 2, 1, 3)
        v = v.reshape(B, T, n_heads, D).transpose(0, 2, 1, 3)
        att = jnp.einsum("bhqd,bhkd->bhqk", q, k) / math.sqrt(D) + bias
        att = jax.nn.softmax(att, axis=-1)
        y = jnp.einsum("bhqk,bhkd->bhqd", att, v).transpose(0, 2, 1, 3).reshape(B, T, C)
        x = x + y @ wo
        h2 = _layernorm(x, ln2w, ln2b)
        x = x + _new_gelu(h2 @ wfc) @ wpr
    return x


# ------------------------- main -------------------------

if __name__ == "__main__":
    # small config consistent with the module (C=128 keeps the lane dim aligned)
    VOCAB, BLOCK_SIZE, N_EMBD, N_HEADS, N_LAYERS = 50, 8, 128, 4, 2
    B, T = 2, 8

    key = jax.random.PRNGKey(0)
    k_param, k_idx, k_seg = jax.random.split(key, 3)

    params = init_params(k_param, vocab_size=VOCAB, block_size=BLOCK_SIZE,
                         n_embd=N_EMBD, n_layers=N_LAYERS)

    idx = jax.random.randint(k_idx, (B, T), 0, VOCAB, dtype=jnp.int32)
    idx = idx.at[:, 0].set(1)  # at least one non-padding key per row
    segments = jax.random.randint(k_seg, (B, T), 0, 3, dtype=jnp.int32)

    out = bert_core_forward(idx, segments, params,
                            block_size=BLOCK_SIZE, n_heads=N_HEADS)
    out = jax.block_until_ready(out)

    ref = _reference_forward(idx, segments, params,
                             block_size=BLOCK_SIZE, n_heads=N_HEADS)
    out_f32 = out.astype(jnp.float32)
    assert out.shape == (B, T, N_EMBD)
    assert bool(jnp.all(jnp.isfinite(out_f32))), "non-finite values in kernel output"
    # bf16 compute + approx reciprocal -> compare against the f32 reference loosely
    assert jnp.allclose(out_f32, ref, rtol=3e-2, atol=3e-2), "mismatch vs JAX reference"

    print("KERNEL_OK")
</pallas_src>

<mosaic_0001>
module attributes {stable_mosaic.version = 11 : i64} {
  func.func @_core_kernel(%arg0: i32, %arg1: i32, %arg2: memref<1x8x128xbf16, #tpu.memory_space<vmem>>, %arg3: memref<1x1x8xf32, #tpu.memory_space<vmem>>, %arg4: memref<1x1x128xf32, #tpu.memory_space<vmem>>, %arg5: memref<1x1x128xf32, #tpu.memory_space<vmem>>, %arg6: memref<1x128x384xbf16, #tpu.memory_space<vmem>>, %arg7: memref<1x128x128xbf16, #tpu.memory_space<vmem>>, %arg8: memref<1x1x128xf32, #tpu.memory_space<vmem>>, %arg9: memref<1x1x128xf32, #tpu.memory_space<vmem>>, %arg10: memref<1x128x512xbf16, #tpu.memory_space<vmem>>, %arg11: memref<1x512x128xbf16, #tpu.memory_space<vmem>>, %arg12: memref<1x8x128xbf16, #tpu.memory_space<vmem>>, %arg13: memref<8x128xf32, #tpu.memory_space<vmem>>) attributes {dimension_semantics = [#tpu.dimension_semantics<parallel>, #tpu.dimension_semantics<arbitrary>], iteration_bounds = array<i64: 2, 2>, scalar_prefetch = 0 : i64, scratch_operands = 1 : i64, tpu.core_type = #tpu.core_type<tc>, window_params = [{transform_indices = @transform_0, window_bounds = array<i64: 1, 8, 128>}, {transform_indices = @transform_1, window_bounds = array<i64: 1, 1, 8>}, {transform_indices = @transform_2, window_bounds = array<i64: 1, 1, 128>}, {transform_indices = @transform_3, window_bounds = array<i64: 1, 1, 128>}, {transform_indices = @transform_4, window_bounds = array<i64: 1, 128, 384>}, {transform_indices = @transform_5, window_bounds = array<i64: 1, 128, 128>}, {transform_indices = @transform_6, window_bounds = array<i64: 1, 1, 128>}, {transform_indices = @transform_7, window_bounds = array<i64: 1, 1, 128>}, {transform_indices = @transform_8, window_bounds = array<i64: 1, 128, 512>}, {transform_indices = @transform_9, window_bounds = array<i64: 1, 512, 128>}, {transform_indices = @transform_10, window_bounds = array<i64: 1, 8, 128>}]} {
    %c0_i32 = arith.constant 0 : i32
    %0 = arith.cmpi eq, %arg1, %c0_i32 : i32
    %1 = arith.extui %0 : i1 to i32
    %c0_i32_0 = arith.constant 0 : i32
    %2 = arith.cmpi ne, %1, %c0_i32_0 : i32
    scf.if %2 {
      %c0_69 = arith.constant 0 : index
      %c0_70 = arith.constant 0 : index
      %c0_71 = arith.constant 0 : index
      %192 = vector.load %arg2[%c0_69, %c0_70, %c0_71] : memref<1x8x128xbf16, #tpu.memory_space<vmem>>, vector<1x8x128xbf16>
      %193 = vector.shape_cast %192 : vector<1x8x128xbf16> to vector<8x128xbf16>
      %194 = arith.extf %193 : vector<8x128xbf16> to vector<8x128xf32>
      %c0_72 = arith.constant 0 : index
      %c0_73 = arith.constant 0 : index
      %195 = vector.load %arg13[%c0_72, %c0_73] : memref<8x128xf32, #tpu.memory_space<vmem>>, vector<8x128xf32>
      tpu.vector_store %arg13[%c0_72, %c0_73], %194 {strides = array<i32>} : memref<8x128xf32, #tpu.memory_space<vmem>>, vector<8x128xf32>,
    } else {
    }
    %c0 = arith.constant 0 : index
    %c0_1 = arith.constant 0 : index
    %3 = vector.load %arg13[%c0, %c0_1] : memref<8x128xf32, #tpu.memory_space<vmem>>, vector<8x128xf32>
    %c0_2 = arith.constant 0 : index
    %c0_3 = arith.constant 0 : index
    %c0_4 = arith.constant 0 : index
    %4 = vector.load %arg3[%c0_2, %c0_3, %c0_4] : memref<1x1x8xf32, #tpu.memory_space<vmem>>, vector<1x1x8xf32>
    %5 = vector.shape_cast %4 : vector<1x1x8xf32> to vector<1x8xf32>
    %c0_5 = arith.constant 0 : index
    %c0_6 = arith.constant 0 : index
    %c0_7 = arith.constant 0 : index
    %6 = vector.load %arg4[%c0_5, %c0_6, %c0_7] : memref<1x1x128xf32, #tpu.memory_space<vmem>>, vector<1x1x128xf32>
    %7 = vector.shape_cast %6 : vector<1x1x128xf32> to vector<1x128xf32>
    %c0_8 = arith.constant 0 : index
    %c0_9 = arith.constant 0 : index
    %c0_10 = arith.constant 0 : index
    %8 = vector.load %arg5[%c0_8, %c0_9, %c0_10] : memref<1x1x128xf32, #tpu.memory_space<vmem>>, vector<1x1x128xf32>
    %9 = vector.shape_cast %8 : vector<1x1x128xf32> to vector<1x128xf32>
    %cst = arith.constant dense<0.000000e+00> : vector<8xf32>
    %10 = vector.multi_reduction <add>, %3, %cst [1] : vector<8x128xf32> to vector<8xf32>
    %11 = vector.shape_cast %10 : vector<8xf32> to vector<8x1xf32>
    %cst_11 = arith.constant 1.280000e+02 : f32
    %12 = vector.broadcast %cst_11 : f32 to vector<8x1xf32>
    %13 = arith.divf %11, %12 : vector<8x1xf32>
    %14 = vector.broadcast %13 : vector<8x1xf32> to vector<8x128xf32>
    %15 = arith.subf %3, %14 : vector<8x128xf32>
    %16 = arith.mulf %15, %15 : vector<8x128xf32>
    %cst_12 = arith.constant dense<0.000000e+00> : vector<8xf32>
    %17 = vector.multi_reduction <add>, %16, %cst_12 [1] : vector<8x128xf32> to vector<8xf32>
    %18 = vector.shape_cast %17 : vector<8xf32> to vector<8x1xf32>
    %cst_13 = arith.constant 1.280000e+02 : f32
    %19 = vector.broadcast %cst_13 : f32 to vector<8x1xf32>
    %20 = arith.divf %18, %19 : vector<8x1xf32>
    %21 = vector.broadcast %13 : vector<8x1xf32> to vector<8x128xf32>
    %22 = arith.subf %3, %21 : vector<8x128xf32>
    %cst_14 = arith.constant 9.99999974E-6 : f32
    %23 = vector.broadcast %cst_14 : f32 to vector<8x1xf32>
    %24 = arith.addf %20, %23 : vector<8x1xf32>
    %25 = math.rsqrt %24 : vector<8x1xf32>
    %26 = vector.broadcast %25 : vector<8x1xf32> to vector<8x128xf32>
    %27 = arith.mulf %22, %26 : vector<8x128xf32>
    %28 = vector.broadcast %7 : vector<1x128xf32> to vector<8x128xf32>
    %29 = arith.mulf %27, %28 : vector<8x128xf32>
    %30 = vector.broadcast %9 : vector<1x128xf32> to vector<8x128xf32>
    %31 = arith.addf %29, %30 : vector<8x128xf32>
    %32 = arith.truncf %31 : vector<8x128xf32> to vector<8x128xbf16>
    %c0_15 = arith.constant 0 : index
    %c0_16 = arith.constant 0 : index
    %c0_17 = arith.constant 0 : index
    %33 = vector.load %arg6[%c0_15, %c0_16, %c0_17] : memref<1x128x384xbf16, #tpu.memory_space<vmem>>, vector<1x128x384xbf16>
    %34 = vector.shape_cast %33 : vector<1x128x384xbf16> to vector<128x384xbf16>
    %cst_18 = arith.constant dense<0.000000e+00> : vector<8x384xf32>
    %35 = tpu.matmul %32, %34, %cst_18 {dimension_numbers = #tpu.dot_dimension_numbers<[1], [0], [0], [1], [0, 0, 1, 1], [], []>} : vector<8x128xbf16>, vector<128x384xbf16>, vector<8x384xf32> -> vector<8x384xf32>
    %c0_19 = arith.constant 0 : index
    %c0_20 = arith.constant 0 : index
    %c0_21 = arith.constant 0 : index
    %36 = vector.load %arg7[%c0_19, %c0_20, %c0_21] : memref<1x128x128xbf16, #tpu.memory_space<vmem>>, vector<1x128x128xbf16>
    %37 = vector.shape_cast %36 : vector<1x128x128xbf16> to vector<128x128xbf16>
    %cst_22 = arith.constant 0.000000e+00 : f32
    %38 = vector.broadcast %cst_22 : f32 to vector<8x128xf32>
    %39 = vector.extract_strided_slice %35 {offsets = [0, 0], sizes = [8, 32], strides = [1, 1]} : vector<8x384xf32> to vector<8x32xf32>
    %40 = arith.truncf %39 : vector<8x32xf32> to vector<8x32xbf16>
    %41 = vector.extract_strided_slice %35 {offsets = [0, 128], sizes = [8, 32], strides = [1, 1]} : vector<8x384xf32> to vector<8x32xf32>
    %42 = arith.truncf %41 : vector<8x32xf32> to vector<8x32xbf16>
    %43 = vector.extract_strided_slice %35 {offsets = [0, 256], sizes = [8, 32], strides = [1, 1]} : vector<8x384xf32> to vector<8x32xf32>
    %44 = arith.truncf %43 : vector<8x32xf32> to vector<8x32xbf16>
    %cst_23 = arith.constant dense<0.000000e+00> : vector<8x8xf32>
    %45 = tpu.matmul %40, %42, %cst_23 {dimension_numbers = #tpu.dot_dimension_numbers<[1], [1], [0], [0], [0, 0, 1, 0], [], []>} : vector<8x32xbf16>, vector<8x32xbf16>, vector<8x8xf32> -> vector<8x8xf32>
    %46 = vector.broadcast %5 : vector<1x8xf32> to vector<8x8xf32>
    %47 = arith.addf %45, %46 : vector<8x8xf32>
    %cst_24 = arith.constant dense<0xFF800000> : vector<8xf32>
    %48 = vector.multi_reduction <maximumf>, %47, %cst_24 [1] : vector<8x8xf32> to vector<8xf32>
    %49 = vector.shape_cast %48 : vector<8xf32> to vector<8x1xf32>
    %50 = vector.broadcast %49 : vector<8x1xf32> to vector<8x8xf32>
    %51 = arith.subf %47, %50 : vector<8x8xf32>
    %52 = math.exp %51 : vector<8x8xf32>
    %cst_25 = arith.constant dense<0.000000e+00> : vector<8xf32>
    %53 = vector.multi_reduction <add>, %52, %cst_25 [1] : vector<8x8xf32> to vector<8xf32>
    %54 = vector.shape_cast %53 : vector<8xf32> to vector<8x1xf32>
    %55 = tpu.reciprocal %54 {approx = true} : vector<8x1xf32> -> vector<8x1xf32>
    %56 = vector.broadcast %55 : vector<8x1xf32> to vector<8x8xf32>
    %57 = arith.mulf %52, %56 : vector<8x8xf32>
    %58 = arith.truncf %57 : vector<8x8xf32> to vector<8x8xbf16>
    %cst_26 = arith.constant dense<0.000000e+00> : vector<8x32xf32>
    %59 = tpu.matmul %58, %44, %cst_26 {dimension_numbers = #tpu.dot_dimension_numbers<[1], [0], [0], [1], [0, 0, 1, 1], [], []>} : vector<8x8xbf16>, vector<8x32xbf16>, vector<8x32xf32> -> vector<8x32xf32>
    %60 = arith.truncf %59 : vector<8x32xf32> to vector<8x32xbf16>
    %61 = vector.extract_strided_slice %37 {offsets = [0, 0], sizes = [32, 128], strides = [1, 1]} : vector<128x128xbf16> to vector<32x128xbf16>
    %cst_27 = arith.constant dense<0.000000e+00> : vector<8x128xf32>
    %62 = tpu.matmul %60, %61, %cst_27 {dimension_numbers = #tpu.dot_dimension_numbers<[1], [0], [0], [1], [0, 0, 1, 1], [], []>} : vector<8x32xbf16>, vector<32x128xbf16>, vector<8x128xf32> -> vector<8x128xf32>
    %63 = arith.addf %38, %62 : vector<8x128xf32>
    %64 = vector.extract_strided_slice %35 {offsets = [0, 32], sizes = [8, 32], strides = [1, 1]} : vector<8x384xf32> to vector<8x32xf32>
    %65 = arith.truncf %64 : vector<8x32xf32> to vector<8x32xbf16>
    %66 = vector.extract_strided_slice %35 {offsets = [0, 160], sizes = [8, 32], strides = [1, 1]} : vector<8x384xf32> to vector<8x32xf32>
    %67 = arith.truncf %66 : vector<8x32xf32> to vector<8x32xbf16>
    %68 = vector.extract_strided_slice %35 {offsets = [0, 288], sizes = [8, 32], strides = [1, 1]} : vector<8x384xf32> to vector<8x32xf32>
    %69 = arith.truncf %68 : vector<8x32xf32> to vector<8x32xbf16>
    %cst_28 = arith.constant dense<0.000000e+00> : vector<8x8xf32>
    %70 = tpu.matmul %65, %67, %cst_28 {dimension_numbers = #tpu.dot_dimension_numbers<[1], [1], [0], [0], [0, 0, 1, 0], [], []>} : vector<8x32xbf16>, vector<8x32xbf16>, vector<8x8xf32> -> vector<8x8xf32>
    %71 = vector.broadcast %5 : vector<1x8xf32> to vector<8x8xf32>
    %72 = arith.addf %70, %71 : vector<8x8xf32>
    %cst_29 = arith.constant dense<0xFF800000> : vector<8xf32>
    %73 = vector.multi_reduction <maximumf>, %72, %cst_29 [1] : vector<8x8xf32> to vector<8xf32>
    %74 = vector.shape_cast %73 : vector<8xf32> to vector<8x1xf32>
    %75 = vector.broadcast %74 : vector<8x1xf32> to vector<8x8xf32>
    %76 = arith.subf %72, %75 : vector<8x8xf32>
    %77 = math.exp %76 : vector<8x8xf32>
    %cst_30 = arith.constant dense<0.000000e+00> : vector<8xf32>
    %78 = vector.multi_reduction <add>, %77, %cst_30 [1] : vector<8x8xf32> to vector<8xf32>
    %79 = vector.shape_cast %78 : vector<8xf32> to vector<8x1xf32>
    %80 = tpu.reciprocal %79 {approx = true} : vector<8x1xf32> -> vector<8x1xf32>
    %81 = vector.broadcast %80 : vector<8x1xf32> to vector<8x8xf32>
    %82 = arith.mulf %77, %81 : vector<8x8xf32>
    %83 = arith.truncf %82 : vector<8x8xf32> to vector<8x8xbf16>
    %cst_31 = arith.constant dense<0.000000e+00> : vector<8x32xf32>
    %84 = tpu.matmul %83, %69, %cst_31 {dimension_numbers = #tpu.dot_dimension_numbers<[1], [0], [0], [1], [0, 0, 1, 1], [], []>} : vector<8x8xbf16>, vector<8x32xbf16>, vector<8x32xf32> -> vector<8x32xf32>
    %85 = arith.truncf %84 : vector<8x32xf32> to vector<8x32xbf16>
    %86 = vector.extract_strided_slice %37 {offsets = [32, 0], sizes = [32, 128], strides = [1, 1]} : vector<128x128xbf16> to vector<32x128xbf16>
    %cst_32 = arith.constant dense<0.000000e+00> : vector<8x128xf32>
    %87 = tpu.matmul %85, %86, %cst_32 {dimension_numbers = #tpu.dot_dimension_numbers<[1], [0], [0], [1], [0, 0, 1, 1], [], []>} : vector<8x32xbf16>, vector<32x128xbf16>, vector<8x128xf32> -> vector<8x128xf32>
    %88 = arith.addf %63, %87 : vector<8x128xf32>
    %89 = vector.extract_strided_slice %35 {offsets = [0, 64], sizes = [8, 32], strides = [1, 1]} : vector<8x384xf32> to vector<8x32xf32>
    %90 = arith.truncf %89 : vector<8x32xf32> to vector<8x32xbf16>
    %91 = vector.extract_strided_slice %35 {offsets = [0, 192], sizes = [8, 32], strides = [1, 1]} : vector<8x384xf32> to vector<8x32xf32>
    %92 = arith.truncf %91 : vector<8x32xf32> to vector<8x32xbf16>
    %93 = vector.extract_strided_slice %35 {offsets = [0, 320], sizes = [8, 32], strides = [1, 1]} : vector<8x384xf32> to vector<8x32xf32>
    %94 = arith.truncf %93 : vector<8x32xf32> to vector<8x32xbf16>
    %cst_33 = arith.constant dense<0.000000e+00> : vector<8x8xf32>
    %95 = tpu.matmul %90, %92, %cst_33 {dimension_numbers = #tpu.dot_dimension_numbers<[1], [1], [0], [0], [0, 0, 1, 0], [], []>} : vector<8x32xbf16>, vector<8x32xbf16>, vector<8x8xf32> -> vector<8x8xf32>
    %96 = vector.broadcast %5 : vector<1x8xf32> to vector<8x8xf32>
    %97 = arith.addf %95, %96 : vector<8x8xf32>
    %cst_34 = arith.constant dense<0xFF800000> : vector<8xf32>
    %98 = vector.multi_reduction <maximumf>, %97, %cst_34 [1] : vector<8x8xf32> to vector<8xf32>
    %99 = vector.shape_cast %98 : vector<8xf32> to vector<8x1xf32>
    %100 = vector.broadcast %99 : vector<8x1xf32> to vector<8x8xf32>
    %101 = arith.subf %97, %100 : vector<8x8xf32>
    %102 = math.exp %101 : vector<8x8xf32>
    %cst_35 = arith.constant dense<0.000000e+00> : vector<8xf32>
    %103 = vector.multi_reduction <add>, %102, %cst_35 [1] : vector<8x8xf32> to vector<8xf32>
    %104 = vector.shape_cast %103 : vector<8xf32> to vector<8x1xf32>
    %105 = tpu.reciprocal %104 {approx = true} : vector<8x1xf32> -> vector<8x1xf32>
    %106 = vector.broadcast %105 : vector<8x1xf32> to vector<8x8xf32>
    %107 = arith.mulf %102, %106 : vector<8x8xf32>
    %108 = arith.truncf %107 : vector<8x8xf32> to vector<8x8xbf16>
    %cst_36 = arith.constant dense<0.000000e+00> : vector<8x32xf32>
    %109 = tpu.matmul %108, %94, %cst_36 {dimension_numbers = #tpu.dot_dimension_numbers<[1], [0], [0], [1], [0, 0, 1, 1], [], []>} : vector<8x8xbf16>, vector<8x32xbf16>, vector<8x32xf32> -> vector<8x32xf32>
    %110 = arith.truncf %109 : vector<8x32xf32> to vector<8x32xbf16>
    %111 = vector.extract_strided_slice %37 {offsets = [64, 0], sizes = [32, 128], strides = [1, 1]} : vector<128x128xbf16> to vector<32x128xbf16>
    %cst_37 = arith.constant dense<0.000000e+00> : vector<8x128xf32>
    %112 = tpu.matmul %110, %111, %cst_37 {dimension_numbers = #tpu.dot_dimension_numbers<[1], [0], [0], [1], [0, 0, 1, 1], [], []>} : vector<8x32xbf16>, vector<32x128xbf16>, vector<8x128xf32> -> vector<8x128xf32>
    %113 = arith.addf %88, %112 : vector<8x128xf32>
    %114 = vector.extract_strided_slice %35 {offsets = [0, 96], sizes = [8, 32], strides = [1, 1]} : vector<8x384xf32> to vector<8x32xf32>
    %115 = arith.truncf %114 : vector<8x32xf32> to vector<8x32xbf16>
    %116 = vector.extract_strided_slice %35 {offsets = [0, 224], sizes = [8, 32], strides = [1, 1]} : vector<8x384xf32> to vector<8x32xf32>
    %117 = arith.truncf %116 : vector<8x32xf32> to vector<8x32xbf16>
    %118 = vector.extract_strided_slice %35 {offsets = [0, 352], sizes = [8, 32], strides = [1, 1]} : vector<8x384xf32> to vector<8x32xf32>
    %119 = arith.truncf %118 : vector<8x32xf32> to vector<8x32xbf16>
    %cst_38 = arith.constant dense<0.000000e+00> : vector<8x8xf32>
    %120 = tpu.matmul %115, %117, %cst_38 {dimension_numbers = #tpu.dot_dimension_numbers<[1], [1], [0], [0], [0, 0, 1, 0], [], []>} : vector<8x32xbf16>, vector<8x32xbf16>, vector<8x8xf32> -> vector<8x8xf32>
    %121 = vector.broadcast %5 : vector<1x8xf32> to vector<8x8xf32>
    %122 = arith.addf %120, %121 : vector<8x8xf32>
    %cst_39 = arith.constant dense<0xFF800000> : vector<8xf32>
    %123 = vector.multi_reduction <maximumf>, %122, %cst_39 [1] : vector<8x8xf32> to vector<8xf32>
    %124 = vector.shape_cast %123 : vector<8xf32> to vector<8x1xf32>
    %125 = vector.broadcast %124 : vector<8x1xf32> to vector<8x8xf32>
    %126 = arith.subf %122, %125 : vector<8x8xf32>
    %127 = math.exp %126 : vector<8x8xf32>
    %cst_40 = arith.constant dense<0.000000e+00> : vector<8xf32>
    %128 = vector.multi_reduction <add>, %127, %cst_40 [1] : vector<8x8xf32> to vector<8xf32>
    %129 = vector.shape_cast %128 : vector<8xf32> to vector<8x1xf32>
    %130 = tpu.reciprocal %129 {approx = true} : vector<8x1xf32> -> vector<8x1xf32>
    %131 = vector.broadcast %130 : vector<8x1xf32> to vector<8x8xf32>
    %132 = arith.mulf %127, %131 : vector<8x8xf32>
    %133 = arith.truncf %132 : vector<8x8xf32> to vector<8x8xbf16>
    %cst_41 = arith.constant dense<0.000000e+00> : vector<8x32xf32>
    %134 = tpu.matmul %133, %119, %cst_41 {dimension_numbers = #tpu.dot_dimension_numbers<[1], [0], [0], [1], [0, 0, 1, 1], [], []>} : vector<8x8xbf16>, vector<8x32xbf16>, vector<8x32xf32> -> vector<8x32xf32>
    %135 = arith.truncf %134 : vector<8x32xf32> to vector<8x32xbf16>
    %136 = vector.extract_strided_slice %37 {offsets = [96, 0], sizes = [32, 128], strides = [1, 1]} : vector<128x128xbf16> to vector<32x128xbf16>
    %cst_42 = arith.constant dense<0.000000e+00> : vector<8x128xf32>
    %137 = tpu.matmul %135, %136, %cst_42 {dimension_numbers = #tpu.dot_dimension_numbers<[1], [0], [0], [1], [0, 0, 1, 1], [], []>} : vector<8x32xbf16>, vector<32x128xbf16>, vector<8x128xf32> -> vector<8x128xf32>
    %138 = arith.addf %113, %137 : vector<8x128xf32>
    %139 = arith.addf %3, %138 : vector<8x128xf32>
    %c0_43 = arith.constant 0 : index
    %c0_44 = arith.constant 0 : index
    %c0_45 = arith.constant 0 : index
    %140 = vector.load %arg8[%c0_43, %c0_44, %c0_45] : memref<1x1x128xf32, #tpu.memory_space<vmem>>, vector<1x1x128xf32>
    %141 = vector.shape_cast %140 : vector<1x1x128xf32> to vector<1x128xf32>
    %c0_46 = arith.constant 0 : index
    %c0_47 = arith.constant 0 : index
    %c0_48 = arith.constant 0 : index
    %142 = vector.load %arg9[%c0_46, %c0_47, %c0_48] : memref<1x1x128xf32, #tpu.memory_space<vmem>>, vector<1x1x128xf32>
    %143 = vector.shape_cast %142 : vector<1x1x128xf32> to vector<1x128xf32>
    %cst_49 = arith.constant dense<0.000000e+00> : vector<8xf32>
    %144 = vector.multi_reduction <add>, %139, %cst_49 [1] : vector<8x128xf32> to vector<8xf32>
    %145 = vector.shape_cast %144 : vector<8xf32> to vector<8x1xf32>
    %cst_50 = arith.constant 1.280000e+02 : f32
    %146 = vector.broadcast %cst_50 : f32 to vector<8x1xf32>
    %147 = arith.divf %145, %146 : vector<8x1xf32>
    %148 = vector.broadcast %147 : vector<8x1xf32> to vector<8x128xf32>
    %149 = arith.subf %139, %148 : vector<8x128xf32>
    %150 = arith.mulf %149, %149 : vector<8x128xf32>
    %cst_51 = arith.constant dense<0.000000e+00> : vector<8xf32>
    %151 = vector.multi_reduction <add>, %150, %cst_51 [1] : vector<8x128xf32> to vector<8xf32>
    %152 = vector.shape_cast %151 : vector<8xf32> to vector<8x1xf32>
    %cst_52 = arith.constant 1.280000e+02 : f32
    %153 = vector.broadcast %cst_52 : f32 to vector<8x1xf32>
    %154 = arith.divf %152, %153 : vector<8x1xf32>
    %155 = vector.broadcast %147 : vector<8x1xf32> to vector<8x128xf32>
    %156 = arith.subf %139, %155 : vector<8x128xf32>
    %cst_53 = arith.constant 9.99999974E-6 : f32
    %157 = vector.broadcast %cst_53 : f32 to vector<8x1xf32>
    %158 = arith.addf %154, %157 : vector<8x1xf32>
    %159 = math.rsqrt %158 : vector<8x1xf32>
    %160 = vector.broadcast %159 : vector<8x1xf32> to vector<8x128xf32>
    %161 = arith.mulf %156, %160 : vector<8x128xf32>
    %162 = vector.broadcast %141 : vector<1x128xf32> to vector<8x128xf32>
    %163 = arith.mulf %161, %162 : vector<8x128xf32>
    %164 = vector.broadcast %143 : vector<1x128xf32> to vector<8x128xf32>
    %165 = arith.addf %163, %164 : vector<8x128xf32>
    %166 = arith.truncf %165 : vector<8x128xf32> to vector<8x128xbf16>
    %c0_54 = arith.constant 0 : index
    %c0_55 = arith.constant 0 : index
    %c0_56 = arith.constant 0 : index
    %167 = vector.load %arg10[%c0_54, %c0_55, %c0_56] : memref<1x128x512xbf16, #tpu.memory_space<vmem>>, vector<1x128x512xbf16>
    %168 = vector.shape_cast %167 : vector<1x128x512xbf16> to vector<128x512xbf16>
    %cst_57 = arith.constant dense<0.000000e+00> : vector<8x512xf32>
    %169 = tpu.matmul %166, %168, %cst_57 {dimension_numbers = #tpu.dot_dimension_numbers<[1], [0], [0], [1], [0, 0, 1, 1], [], []>} : vector<8x128xbf16>, vector<128x512xbf16>, vector<8x512xf32> -> vector<8x512xf32>
    %cst_58 = arith.constant 5.000000e-01 : f32
    %170 = vector.broadcast %cst_58 : f32 to vector<8x512xf32>
    %171 = arith.mulf %170, %169 : vector<8x512xf32>
    %cst_59 = arith.constant 4.471500e-02 : f32
    %172 = vector.broadcast %cst_59 : f32 to vector<8x512xf32>
    %173 = arith.mulf %172, %169 : vector<8x512xf32>
    %174 = arith.mulf %173, %169 : vector<8x512xf32>
    %175 = arith.mulf %174, %169 : vector<8x512xf32>
    %176 = arith.addf %169, %175 : vector<8x512xf32>
    %cst_60 = arith.constant 0.797884583 : f32
    %177 = vector.broadcast %cst_60 : f32 to vector<8x512xf32>
    %178 = arith.mulf %177, %176 : vector<8x512xf32>
    %179 = math.tanh %178 : vector<8x512xf32>
    %cst_61 = arith.constant 1.000000e+00 : f32
    %180 = vector.broadcast %cst_61 : f32 to vector<8x512xf32>
    %181 = arith.addf %180, %179 : vector<8x512xf32>
    %182 = arith.mulf %171, %181 : vector<8x512xf32>
    %183 = arith.truncf %182 : vector<8x512xf32> to vector<8x512xbf16>
    %c0_62 = arith.constant 0 : index
    %c0_63 = arith.constant 0 : index
    %c0_64 = arith.constant 0 : index
    %184 = vector.load %arg11[%c0_62, %c0_63, %c0_64] : memref<1x512x128xbf16, #tpu.memory_space<vmem>>, vector<1x512x128xbf16>
    %185 = vector.shape_cast %184 : vector<1x512x128xbf16> to vector<512x128xbf16>
    %cst_65 = arith.constant dense<0.000000e+00> : vector<8x128xf32>
    %186 = tpu.matmul %183, %185, %cst_65 {dimension_numbers = #tpu.dot_dimension_numbers<[1], [0], [0], [1], [0, 0, 1, 1], [], []>} : vector<8x512xbf16>, vector<512x128xbf16>, vector<8x128xf32> -> vector<8x128xf32>
    %187 = arith.addf %139, %186 : vector<8x128xf32>
    %c0_66 = arith.constant 0 : index
    %c0_67 = arith.constant 0 : index
    %188 = vector.load %arg13[%c0_66, %c0_67] : memref<8x128xf32, #tpu.memory_space<vmem>>, vector<8x128xf32>
    tpu.vector_store %arg13[%c0_66, %c0_67], %187 {strides = array<i32>} : memref<8x128xf32, #tpu.memory_space<vmem>>, vector<8x128xf32>,
    %c1_i32 = arith.constant 1 : i32
    %189 = arith.cmpi eq, %arg1, %c1_i32 : i32
    %190 = arith.extui %189 : i1 to i32
    %c0_i32_68 = arith.constant 0 : i32
    %191 = arith.cmpi ne, %190, %c0_i32_68 : i32
    scf.if %191 {
      %192 = arith.truncf %187 : vector<8x128xf32> to vector<8x128xbf16>
      %c0_69 = arith.constant 0 : index
      %c0_70 = arith.constant 0 : index
      %c0_71 = arith.constant 0 : index
      %193 = vector.load %arg12[%c0_69, %c0_70, %c0_71] : memref<1x8x128xbf16, #tpu.memory_space<vmem>>, vector<1x8x128xbf16>
      %194 = vector.shape_cast %193 : vector<1x8x128xbf16> to vector<8x128xbf16>
      %195 = vector.shape_cast %192 : vector<8x128xbf16> to vector<1x8x128xbf16>
      tpu.vector_store %arg12[%c0_69, %c0_70, %c0_71], %195 {strides = array<i32>} : memref<1x8x128xbf16, #tpu.memory_space<vmem>>, vector<1x8x128xbf16>,
    } else {
    }
    return
  }
  func.func @transform_0(%arg0: i32, %arg1: i32) -> (i32, i32, i32) {
    %c0_i32 = arith.constant 0 : i32
    %c0_i32_0 = arith.constant 0 : i32
    %c0_i32_1 = arith.constant 0 : i32
    return %arg0, %c0_i32, %c0_i32_0 : i32, i32, i32
  }
  func.func @transform_1(%arg0: i32, %arg1: i32) -> (i32, i32, i32) {
    %c0_i32 = arith.constant 0 : i32
    %c0_i32_0 = arith.constant 0 : i32
    %c0_i32_1 = arith.constant 0 : i32
    return %arg0, %c0_i32, %c0_i32_0 : i32, i32, i32
  }
  func.func @transform_2(%arg0: i32, %arg1: i32) -> (i32, i32, i32) {
    %c0_i32 = arith.constant 0 : i32
    %c0_i32_0 = arith.constant 0 : i32
    %c0_i32_1 = arith.constant 0 : i32
    return %arg1, %c0_i32, %c0_i32_0 : i32, i32, i32
  }
  func.func @transform_3(%arg0: i32, %arg1: i32) -> (i32, i32, i32) {
    %c0_i32 = arith.constant 0 : i32
    %c0_i32_0 = arith.constant 0 : i32
    %c0_i32_1 = arith.constant 0 : i32
    return %arg1, %c0_i32, %c0_i32_0 : i32, i32, i32
  }
  func.func @transform_4(%arg0: i32, %arg1: i32) -> (i32, i32, i32) {
    %c0_i32 = arith.constant 0 : i32
    %c0_i32_0 = arith.constant 0 : i32
    %c0_i32_1 = arith.constant 0 : i32
    return %arg1, %c0_i32, %c0_i32_0 : i32, i32, i32
  }
  func.func @transform_5(%arg0: i32, %arg1: i32) -> (i32, i32, i32) {
    %c0_i32 = arith.constant 0 : i32
    %c0_i32_0 = arith.constant 0 : i32
    %c0_i32_1 = arith.constant 0 : i32
    return %arg1, %c0_i32, %c0_i32_0 : i32, i32, i32
  }
  func.func @transform_6(%arg0: i32, %arg1: i32) -> (i32, i32, i32) {
    %c0_i32 = arith.constant 0 : i32
    %c0_i32_0 = arith.constant 0 : i32
    %c0_i32_1 = arith.constant 0 : i32
    return %arg1, %c0_i32, %c0_i32_0 : i32, i32, i32
  }
  func.func @transform_7(%arg0: i32, %arg1: i32) -> (i32, i32, i32) {
    %c0_i32 = arith.constant 0 : i32
    %c0_i32_0 = arith.constant 0 : i32
    %c0_i32_1 = arith.constant 0 : i32
    return %arg1, %c0_i32, %c0_i32_0 : i32, i32, i32
  }
  func.func @transform_8(%arg0: i32, %arg1: i32) -> (i32, i32, i32) {
    %c0_i32 = arith.constant 0 : i32
    %c0_i32_0 = arith.constant 0 : i32
    %c0_i32_1 = arith.constant 0 : i32
    return %arg1, %c0_i32, %c0_i32_0 : i32, i32, i32
  }
  func.func @transform_9(%arg0: i32, %arg1: i32) -> (i32, i32, i32) {
    %c0_i32 = arith.constant 0 : i32
    %c0_i32_0 = arith.constant 0 : i32
    %c0_i32_1 = arith.constant 0 : i32
    return %arg1, %c0_i32, %c0_i32_0 : i32, i32, i32
  }
  func.func @transform_10(%arg0: i32, %arg1: i32) -> (i32, i32, i32) {
    %c0_i32 = arith.constant 0 : i32
    %c0_i32_0 = arith.constant 0 : i32
    %c0_i32_1 = arith.constant 0 : i32
    return %arg0, %c0_i32, %c0_i32_0 : i32, i32, i32
  }
}

</mosaic_0001>

<bundles_post_ra>
// kernel: tpu_custom_call.1
= control target key start
LH: loop header
LB: loop body
LE: loop exit
PB: predicated region body
PF: predicated region fallthrough
CT: control target
= control target key end

     0   :  { %s4140_s0 = inlined_call_operand.hbm [shape: bf16[2,8,128], index: 0, kind: input, shape index: {}]   ;;  %s4141_s1 = inlined_call_operand.hbm [shape: f32[2,1,8], index: 1, kind: input, shape index: {}]   ;;  %s4142_s2 = inlined_call_operand.vmem [shape: f32[2,1,128], index: 2, kind: input, shape index: {}]   ;;  %s4143_s3 = inlined_call_operand.vmem [shape: f32[2,1,128], index: 3, kind: input, shape index: {}]   ;;  %s4144_s4 = inlined_call_operand.hbm [shape: bf16[2,128,384], index: 4, kind: input, shape index: {}]   ;;  %s4145_s5 = inlined_call_operand.hbm [shape: bf16[2,128,128], index: 5, kind: input, shape index: {}]   ;;  %s4146_s6 = inlined_call_operand.vmem [shape: f32[2,1,128], index: 6, kind: input, shape index: {}]   ;;  %s4147_s7 = inlined_call_operand.vmem [shape: f32[2,1,128], index: 7, kind: input, shape index: {}]   ;;  %s4148_s8 = inlined_call_operand.hbm [shape: bf16[2,128,512], index: 8, kind: input, shape index: {}]   ;;  %s4149_s9 = inlined_call_operand.hbm [shape: bf16[2,512,128], index: 9, kind: input, shape index: {}]   ;;  %s4150_s10 = inlined_call_operand.hbm [shape: bf16[2,8,128], index: 10, kind: output, shape index: {}]  }
   0x1   :  { %4172 = sst [smem:[#allocation36_spill]] %s4140_s0 }
   0x2   :  { %4173 = sst [smem:[#allocation37_spill]] %s4141_s1 }
   0x3   :  { %4174 = sst [smem:[#allocation38_spill]] %s4142_s2 }
   0x4   :  { %4175 = sst [smem:[#allocation39_spill]] %s4143_s3 }
   0x5   :  { %4176 = sst [smem:[#allocation40_spill]] %s4144_s4 }
   0x6   :  { %4177 = sst [smem:[#allocation41_spill]] %s4145_s5 }
   0x7   :  { %4178 = sst [smem:[#allocation42_spill]] %s4146_s6 }
   0x8   :  { %4179 = sst [smem:[#allocation43_spill]] %s4147_s7 }
   0x9   :  { %4180 = sst [smem:[#allocation44_spill]] %s4150_s10 }
   0xa   :  { %15 = vsyncpa [#allocation4], 0 }
   0xb   :  { %17 = vsyncpa [#allocation4 + $0x1], 0 }
   0xc   :  { %18 = vsyncpa [#allocation7], 0 }
   0xd   :  { %20 = vsyncpa [#allocation7 + $0x1], 0 }
   0xe   :  { %21 = vsyncpa [#allocation10], 0 }
   0xf   :  { %23 = vsyncpa [#allocation10 + $0x1], 0 }
  0x10   :  { %24 = vsyncpa [#allocation13], 0 }
  0x11   :  { %26 = vsyncpa [#allocation13 + $0x1], 0 }
  0x12   :  { %27 = vsyncpa [#allocation5], 0 }
  0x13   :  { %29 = vsyncpa [#allocation5 + $0x1], 0  ;;  %s3522_s13 = smov 0   ;;  %s3524_s14 = smov 0  }
  0x14   :  { %s3526_s15 = smov 0   ;;  %s3528_s16 = smov 0  }
  0x15   :  { %s3530_s17 = smov 0   ;;  %s3532_s18 = smov 0  }
  0x16   :  { %s3534_s19 = smov 0   ;;  %s3536_s20 = smov 0  }
  0x17   :  { %s3538_s21 = smov 0   ;;  %s3540_s22 = smov 0  }
  0x18   :  { %s3542_s23 = smov 0  }
  0x19 LB: > { %4181 = sst [smem:[#allocation21_spill]] %s3410_s14  ;;  %s3578_s24 = sadd.s32 4294967295, %s3446_s23   ;;  %s3446_s23 = sphi %s3542_s23, %s35_s23   ;;  %s3442_s22 = sphi %s3540_s22, %s4249_s22   ;;  %s3438_s21 = sphi %s3538_s21, %s4248_s21   ;;  %s3434_s20 = sphi %s3536_s20, %s4247_s20   ;;  %s3430_s19 = sphi %s3534_s19, %s4246_s19   ;;  %s3426_s18 = sphi %s3532_s18, %s4241_s18   ;;  %s3422_s17 = sphi %s3530_s17, %s4245_s17   ;;  %s3418_s16 = sphi %s3528_s16, %s4244_s16   ;;  %s3414_s15 = sphi %s3526_s15, %s4239_s15   ;;  %s3410_s14 = sphi %s3524_s14, %s4238_s14   ;;  %s3406_s13 = sphi %s3522_s13, %s4237_s13  }
  0x1a   : > { %4182 = sst [smem:[#allocation22_spill]] %s3414_s15  ;;  %s2527_s25 = sadd.s32 4294967294, %s3446_s23  }
  0x1b   : > { %4183 = sst [smem:[#allocation23_spill]] %s3418_s16  ;;  %s44_s26 = sadd.s32 1, %s3438_s21 }
  0x1c   : > { %4184 = sst [smem:[#allocation24_spill]] %s3426_s18  ;;  %s47_s27 = sadd.s32 1, %s3442_s22 }
  0x1d   : > { %4185 = sst [smem:[#allocation25_spill]] %s3430_s19  ;;  %p45_p0 = scmp.ge.s32.totalorder %s44_s26, 2 }
  0x1e   : > { %4186 = sst [smem:[#allocation26_spill]] %s3434_s20  ;;  %s54_s28 = sadd.s32 1, %s3426_s18 }
  0x1f   : > { %4187 = sst [smem:[#allocation27_spill]] %s3446_s23  ;;  %p61_p1 = scmp.ne.s32.totalorder %s3426_s18, %s3422_s17 }
  0x20   : > { %4188 = sst [smem:[#allocation28_spill]] %s3578_s24  ;;  %p62_p2 = scmp.eq.s32.totalorder %s3446_s23, 0 }
  0x21   : > { %s4251_s26 = smov (%p45_p0, %s44_s26), 0  ;;  %s4253_s27 = smov (!%p45_p0, %s47_s27), %s3442_s22 }
  0x22   : > { %4189 = sst [smem:[#allocation29_spill]] %s4251_s26  ;;  %p3595_p3 = por %p62_p2, %p61_p1 }
  0x23   : > { %p4153_p4 = scmp.ne.s32.totalorder %s3422_s17, %s3418_s16  ;;  %p49_p5 = scmp.ge.s32.totalorder %s4253_s27, 2 }
  0x24   : > { %p68_p6 = scmp.eq.s32.totalorder %s3578_s24, 0  ;;  %s155_s30 = ssub.s32 %s3438_s21, %s4251_s26 }
  0x25   : > { %s158_s11 = sadd.s32 1, %s3414_s15  ;;  %s4255_s27 = smov (%p49_p5, %s4253_s27), 0 }
  0x26   : > { %4191 = sst [smem:[#allocation30_spill]] %s4255_s27  ;;  %p3612_p7 = por %p68_p6, %p4153_p4 }
  0x27   : > { %p156_p8 = scmp.eq.s32.totalorder %s155_s30, 0  ;;  %s51_s26 = ssub.s32 %s3442_s22, %s4255_s27 }
  0x28   : > { %s4192_s12 = scalar_select %p3612_p7, 1, 0 }
  0x29   : > { %p165_p9 = scmp.ne.s32.totalorder %s3414_s15, %s3410_s14  ;;  %p52_p10 = scmp.eq.s32.totalorder %s51_s26, 0 }
  0x2a   : > { %p171_p11 = scmp.ne.s32.totalorder %s3410_s14, %s3406_s13  ;;  %p325_p0 = scmp.eq.s32.totalorder %s3578_s24, 3 }
  0x2b   : > { %s3623_s10 = scalar_select %p156_p8, %s3414_s15, %s158_s11  }
  0x2c   : > { %s3626_s20 = scalar_select %p52_p10, %s3426_s18, %s54_s28  }
  0x2d   : > { %4193 = sst [smem:[#allocation31_spill]] %s3623_s10  ;;  %p3630_p12 = por %p165_p9, %p62_p2 }
  0x2e   : > { %4194 = sst [smem:[#allocation32_spill]] %s3626_s20  ;;  %p3636_p13 = por %p171_p11, %p68_p6 }
  0x2f   : > { %p331_p5 = scmp.eq.s32.totalorder %s2527_s25, 3  ;;  %p2892_p4 = scmp.lt.s32.totalorder %s3446_s23, 4 }
  0x30   : > { %s4196_s6 = scalar_select %p3636_p13, 1, 0 }
  0x31   : > { %p3645_p7 = por %p325_p0, %p61_p1  ;;  %p4200_p8 = scmp.ne.s32.totalorder %s3422_s17, %s3418_s16 }
  0x32   : > { %4197 = sst [smem:[#allocation33_spill]] %s4196_s6  ;;  %s3657_s28 = sand.u32 1, %s3426_s18  }
  0x33   : > { %s4198_s13 = scalar_select %p3645_p7, 1, 0 }
  0x34   : > { %p3652_p10 = por %p331_p5, %p4200_p8  ;;  %p3663_p2 = pnand %p2892_p4, %p3595_p3 }
  0x35   : > { %4199 = sst [smem:[#allocation34_spill]] %s4198_s13  ;;  %s369_s25 = sand.u32 1, %s3446_s23  }
  0x36   : > { %s4201_s26 = scalar_select %p3652_p10, 1, 0 }
  0x37   : > { %s2532_s11 = sshll.u32 %s3442_s22, 4  ;;  %s372_s27 = scalar_lea.vmem [#allocation6], %s3657_s28 }
  0x38   : > { %4202 = sst [smem:[#allocation35_spill]] %s4201_s26  ;;  %s379_s20 = sshll.u32 %s372_s27, 4  ;;  %s380_s20 = int_to_ptr.vmem [resolvable:$true] %s379_s20 }
  0x39   : > { %s4204_s1 = sld [smem:[#allocation37_spill]]  ;;  %s3675_s18 = scalar_lea.sflag [#allocation7], %s369_s25 }
  0x3a   : > { %p4165_p1 = pneg %p3663_p2  ;;  %s3155_s29 = scalar_lea.vmem %s380_s20, 16 }
  0x3b   : > { %p3156_p3 = scmp.ne.s32.totalorder %s380_s20, %s3155_s29  ;;  %s3448_s26 = smov [#allocation6]  }
  0x3c   : > { %s3160_s3 = sshll.u32 %s3448_s26, 4  ;;  %s3161_s3 = int_to_ptr.vmem [resolvable:$false] %s3160_s3 }
  0x3d   : > { %p3158_p6 = pnand %p3156_p3, %p4165_p1  ;;  %s3162_s27 = scalar_lea.vmem %s3161_s3, 32 }
  0x3e   : > { %p3163_p11 = scmp.lt.s32.totalorder %s380_s20, %s3161_s3  ;;  %p3164_p0 = scmp.lt.s32.totalorder %s3162_s27, %s3155_s29 }
  0x3f   : > { %s377_s13 = scalar_lea.hbm %s4204_s1, %s2532_s11  ;;  %p3159_p9 = pneg %p3158_p6 }
  0x40   : > { %p3165_p5 = por %p3164_p0, %p3163_p11 }
  0x42   : > { %p3166_p8 = pnand %p3165_p5, %p3159_p9 }
  0x44   : > { %3169 = shalt.err (!%p3166_p8)
}
  0x45   : > { %2875 = dma.hbm_to_vmem [thread:$0]  (!%p3663_p2), %s377_s13, 16, %s380_s20, %s3675_s18  }
  0x46   : > { %p3689_p3 = pnand %p2892_p4, %p3630_p12  ;;  %p2543_p6 = scmp.ge.s32.totalorder %s3446_s23, 1 }
  0x47   : > { %p492_p9 = scmp.lt.s32.totalorder %s3446_s23, 5  ;;  %s3696_s3 = sand.u32 1, %s3414_s15  }
  0x48   : > { %s2534_s26 = sshll.u32 %s3696_s3, 6  ;;  %s2668_s11 = sshll.u32 %s3438_s21, 10 }
  0x49   : > { %p3698_p11 = pnand %p2543_p6, %p492_p9  ;;  %s4207_s5 = sld [smem:[#allocation41_spill]] }
  0x4a   : > { %s423_s29 = scalar_lea.vmem [#allocation9], %s2534_s26  ;;  %s3709_s1 = scalar_lea.sflag [#allocation10], %s369_s25 }
  0x4b   : > { %s430_s27 = sshll.u32 %s423_s29, 4  ;;  %p4170_p4 = pneg %p3689_p3  ;;  %s431_s27 = int_to_ptr.vmem [resolvable:$true] %s430_s27 }
  0x4c   : > { %s3183_s15 = scalar_lea.vmem %s431_s27, 1024  ;;  %s3449_s2 = smov [#allocation9]  }
  0x4d   : > { %p3184_p12 = scmp.ne.s32.totalorder %s431_s27, %s3183_s15  ;;  %s3188_s19 = sshll.u32 %s3449_s2, 4  ;;  %s3189_s19 = int_to_ptr.vmem [resolvable:$false] %s3188_s19 }
  0x4e   : > { %s3190_s6 = scalar_lea.vmem %s3189_s19, 2048  ;;  %p3191_p8 = scmp.lt.s32.totalorder %s431_s27, %s3189_s19 }
  0x4f   : > { %s429_s13 = scalar_lea.hbm %s4207_s5, %s2668_s11  ;;  %p3186_p0 = pnand %p3184_p12, %p4170_p4 }
  0x50   : > { %p3192_p6 = scmp.lt.s32.totalorder %s3190_s6, %s3183_s15 }
  0x51   : > { %p3187_p5 = pneg %p3186_p0 }
  0x52   : > { %p3193_p9 = por %p3192_p6, %p3191_p8 }
  0x54   : > { %p3194_p1 = pnand %p3193_p9, %p3187_p5 }
  0x56   : > { %3197 = shalt.err (!%p3194_p1)
}
  0x57   : > { %s3450_s26 = smov 64   ;;  %s3451_s25 = smov 4  }
  0x58   : > { %2881 = dma.hbm_to_vmem [thread:$0]  (!%p3689_p3), %s429_s13, 1024, %s431_s27, %s3709_s1, %s3450_s26, %s3450_s26, %s3451_s25  }
  0x59   : > { %s2530_s2 = sshll.u32 %s3657_s28, 2  ;;  %s2531_s6 = sshll.u32 %s3442_s22, 6 }
  0x5a   : > { %s4208_s0 = sld [smem:[#allocation36_spill]]  ;;  %s355_s20 = scalar_lea.vmem [#allocation3], %s2530_s2 }
  0x5b   : > { %s362_s7 = sshll.u32 %s355_s20, 4  ;;  %s2852_s29 = smul.u32 192, %s3696_s3  ;;  %s363_s7 = int_to_ptr.vmem [resolvable:$true] %s362_s7 }
  0x5c   : > { %s2853_s5 = smul.u32 3072, %s3438_s21  ;;  %s352_s23 = scalar_lea.sflag [#allocation4], %s3657_s28 }
  0x5d   : > { %s3211_s14 = scalar_lea.vmem %s363_s7, 64  ;;  %p4209_p12 = pneg %p3663_p2 }
  0x5e   : > { %p3212_p1 = scmp.ne.s32.totalorder %s363_s7, %s3211_s14  ;;  %s3452_s24 = smov [#allocation3]  }
  0x5f   : > { %s3216_s13 = sshll.u32 %s3452_s24, 4  ;;  %s3217_s13 = int_to_ptr.vmem [resolvable:$false] %s3216_s13 }
  0x60   : > { %s360_s11 = scalar_lea.hbm %s4208_s0, %s2531_s6  ;;  %p3214_p0 = pnand %p3212_p1, %p4209_p12 }
  0x61   : > { %s3218_s27 = scalar_lea.vmem %s3217_s13, 128  ;;  %p3219_p8 = scmp.lt.s32.totalorder %s363_s7, %s3217_s13 }
  0x62   : > { %p3215_p5 = pneg %p3214_p0  ;;  %p3220_p6 = scmp.lt.s32.totalorder %s3218_s27, %s3211_s14 }
  0x64   : > { %p3221_p9 = por %p3220_p6, %p3219_p8 }
  0x66   : > { %p3222_p4 = pnand %p3221_p9, %p3215_p5 }
  0x68   : > { %3225 = shalt.err (!%p3222_p4)
}
  0x69   : > { %2872 = dma.hbm_to_vmem [thread:$0]  (!%p3663_p2), %s360_s11, 64, %s363_s7, %s352_s23  }
  0x6a   : > { %s4210_s4 = sld [smem:[#allocation40_spill]]  ;;  %s402_s15 = scalar_lea.vmem [#allocation8], %s2852_s29 }
  0x6b   : > { %s409_s19 = sshll.u32 %s402_s15, 4  ;;  %p4211_p12 = pneg %p3689_p3  ;;  %s410_s19 = int_to_ptr.vmem [resolvable:$true] %s409_s19 }
  0x6c   : > { %s3239_s20 = scalar_lea.vmem %s410_s19, 3072  ;;  %s3453_s14 = smov [#allocation8]  }
  0x6d   : > { %p3240_p1 = scmp.ne.s32.totalorder %s410_s19, %s3239_s20  ;;  %s3244_s24 = sshll.u32 %s3453_s14, 4  ;;  %s3245_s24 = int_to_ptr.vmem [resolvable:$false] %s3244_s24 }
  0x6e   : > { %s3246_s13 = scalar_lea.vmem %s3245_s24, 6144  ;;  %p3247_p4 = scmp.lt.s32.totalorder %s410_s19, %s3245_s24 }
  0x6f   : > { %p3242_p0 = pnand %p3240_p1, %p4211_p12  ;;  %p3248_p5 = scmp.lt.s32.totalorder %s3246_s13, %s3239_s20 }
  0x70   : > { %s408_s6 = scalar_lea.hbm %s4210_s4, %s2853_s5 }
  0x71   : > { %p3243_p10 = pneg %p3242_p0  ;;  %p3249_p2 = por %p3248_p5, %p3247_p4 }
  0x73   : > { %p3250_p8 = pnand %p3249_p2, %p3243_p10 }
  0x75   : > { %3253 = shalt.err (!%p3250_p8)
}
  0x76   : > { %s3454_s23 = smov 192   ;;  %s3455_s5 = smov 12  }
  0x77   : > { %2878 = dma.hbm_to_vmem [thread:$0]  (!%p3689_p3), %s408_s6, 3072, %s410_s19, %s3675_s18, %s3454_s23, %s3454_s23, %s3455_s5  }
  0x78   : > { %s2537_s30 = sshll.u32 %s3696_s3, 8  ;;  %s2669_s11 = sshll.u32 %s3438_s21, 12 }
  0x79   : > { %s462_s27 = scalar_lea.hbm %s4148_s8, %s2669_s11  ;;  %s456_s28 = scalar_lea.vmem [#allocation11], %s2537_s30 }
  0x7a   : > { %s463_s2 = sshll.u32 %s456_s28, 4  ;;  %p4212_p6 = pmov %p4211_p12  ;;  %s464_s2 = int_to_ptr.vmem [resolvable:$true] %s463_s2 }
  0x7b   : > { %s3267_s15 = scalar_lea.vmem %s464_s2, 4096  ;;  %s3456_s20 = smov [#allocation11]  }
  0x7c   : > { %p3268_p10 = scmp.ne.s32.totalorder %s464_s2, %s3267_s15  ;;  %s3272_s14 = sshll.u32 %s3456_s20, 4  ;;  %s3273_s14 = int_to_ptr.vmem [resolvable:$false] %s3272_s14 }
  0x7d   : > { %s3274_s24 = scalar_lea.vmem %s3273_s14, 8192  ;;  %p3275_p12 = scmp.lt.s32.totalorder %s464_s2, %s3273_s14 }
  0x7e   : > { %p3270_p9 = pnand %p3268_p10, %p4212_p6  ;;  %p3276_p0 = scmp.lt.s32.totalorder %s3274_s24, %s3267_s15 }
  0x80   : > { %p3271_p1 = pneg %p3270_p9  ;;  %p3277_p4 = por %p3276_p0, %p3275_p12 }
  0x82   : > { %p3278_p5 = pnand %p3277_p4, %p3271_p1 }
  0x84   : > { %3281 = shalt.err (!%p3278_p5)
}
  0x85   : > { %s3457_s18 = smov 256   ;;  %s3458_s6 = smov 16  }
  0x86   : > { %2884 = dma.hbm_to_vmem [thread:$0]  (!%p3689_p3), %s462_s27, 4096, %s464_s2, %s3709_s1, %s3457_s18, %s3457_s18, %s3458_s6  }
  0x87   : > { %s483_s23 = scalar_lea.hbm %s4149_s9, %s2669_s11  ;;  %s477_s5 = scalar_lea.vmem [#allocation12], %s2537_s30 }
  0x88   : > { %s484_s7 = sshll.u32 %s477_s5, 4  ;;  %s474_s29 = scalar_lea.sflag [#allocation13], %s3696_s3  ;;  %s485_s7 = int_to_ptr.vmem [resolvable:$true] %s484_s7 }
  0x89   : > { %s3295_s28 = scalar_lea.vmem %s485_s7, 4096  ;;  %p4213_p8 = pmov %p4212_p6 }
  0x8a   : > { %p3296_p2 = scmp.ne.s32.totalorder %s485_s7, %s3295_s28  ;;  %s3459_s15 = smov [#allocation12]  }
  0x8b   : > { %s3300_s20 = sshll.u32 %s3459_s15, 4  ;;  %s3301_s20 = int_to_ptr.vmem [resolvable:$false] %s3300_s20 }
  0x8c   : > { %p3298_p10 = pnand %p3296_p2, %p4213_p8  ;;  %s3302_s14 = scalar_lea.vmem %s3301_s20, 8192 }
  0x8d   : > { %p3303_p9 = scmp.lt.s32.totalorder %s485_s7, %s3301_s20  ;;  %p3304_p1 = scmp.lt.s32.totalorder %s3302_s14, %s3295_s28 }
  0x8e   : > { %p3299_p6 = pneg %p3298_p10 }
  0x8f   : > { %p3305_p12 = por %p3304_p1, %p3303_p9 }
  0x91   : > { %p3306_p0 = pnand %p3305_p12, %p3299_p6 }
  0x93   : > { %3309 = shalt.err (!%p3306_p0)
}
  0x94   : > { %2887 = dma.hbm_to_vmem [thread:$0]  (!%p3689_p3), %s483_s23, 4096, %s485_s7, %s474_s29, %s3450_s26, %s3450_s26, %s3451_s25  }
  0x95   : > { %496 = sbr.rel (%p3698_p11) target bundleno = 3728 (0xe90), region = 60  ;;  %s3770_s1 = sand.u32 (!%p3698_p11), 1, %s3422_s17  }
  0x96   : > { %s4171_s3 = sshll.u32 (!%p3698_p11), %s3770_s1, 2  ;;  %s499_s30 = scalar_lea.sflag (!%p3698_p11), [#allocation4], %s3770_s1 }
  0x97   : > { %s3776_s11 = scalar_lea.vmem (!%p3698_p11), [#allocation3], %s4171_s3  ;;  %p4214_p4 = scmp.ne.s32.totalorder (!%p3698_p11), %s4192_s12, 0 }
  0x9a   : > { %3381 = dma.done.wait (%p4214_p4), %s499_s30, 64  }
  0x9b   : > { %3383 = vsyncadd (%p4214_p4), %s499_s30, 4294967232  ;;  %s4215_s10 = sld [smem:[#allocation28_spill]] }
  0xa1   : > { %s507_s16 = sand.u32 1, %s4215_s10  }
  0xa2   : > { %s508_s26 = scalar_lea.sflag [#allocation7], %s507_s16 }
  0xa3   : > { %3385 = dma.done.wait (%p4214_p4), %s508_s26, 16  }
  0xa4   : > { %3387 = vsyncadd (%p4214_p4), %s508_s26, 4294967280  ;;  %s4216_s27 = sld [smem:[#allocation21_spill]] }
  0xaa   : > { %s517_s24 = sand.u32 1, %s4216_s27  }
  0xab   : > { %s2854_s18 = smul.u32 192, %s517_s24 }
  0xad   : > { %s3789_s6 = scalar_lea.vmem [#allocation8], %s2854_s18 }
  0xae   : > { %3389 = dma.done.wait (%p3636_p13), %s508_s26, 3072  }
  0xaf   : > { %3391 = vsyncadd (%p3636_p13), %s508_s26, 4294964224  ;;  %s2545_s19 = sshll.u32 %s517_s24, 6  ;;  %s525_s13 = scalar_lea.sflag [#allocation10], %s507_s16 }
  0xb0   : > { %s3795_s23 = scalar_lea.vmem [#allocation9], %s2545_s19 }
  0xb1   : > { %3393 = dma.done.wait (%p3636_p13), %s525_s13, 5120  }
  0xb2   : > { %3395 = vsyncadd (%p3636_p13), %s525_s13, 4294962176  ;;  %s2546_s12 = sshll.u32 %s517_s24, 8  ;;  %s543_s7 = scalar_lea.sflag [#allocation13], %s517_s24 }
  0xb3   : > { %s3801_s5 = scalar_lea.vmem [#allocation11], %s2546_s12  ;;  %s3803_s29 = scalar_lea.vmem [#allocation12], %s2546_s12 }
  0xb4   : > { %3397 = dma.done.wait (%p3636_p13), %s543_s7, 4096  }
  0xb5   : > { %3399 = vsyncadd (%p3636_p13), %s543_s7, 4294963200  ;;  %s4218_s28 = sld [smem:[#allocation25_spill]]  ;;  %s4223_s0 = sshll.u32 %s3770_s1, 2 }
  0xb6   : > { %s4219_s30 = sld [smem:[#allocation38_spill]]  ;;  %s3831_s4 = scalar_lea.vmem [#allocation14], %s4223_s0 }
  0xb7   : > { %s4220_s27 = sld [smem:[#allocation39_spill]] }
  0xb8   : > { %s4221_s19 = sld [smem:[#allocation42_spill]] }
  0xb9   : > { %s4222_s25 = sld [smem:[#allocation43_spill]] }
  0xbb   : > { %p619_p3 = scmp.lt.s32.totalorder %s4218_s28, 1  ;;  %p2549_p13 = scmp.ne.s32.totalorder %s4218_s28, 0 }
  0xbd   : > { %s3811_s15 = scalar_select %p619_p3, %s4218_s28, 1 }
  0xbe   : > { %635 = sbr.rel (%p2549_p13) target bundleno = 199 (0xc7), region = 88 }
  0xbf   : > { %s621_s10 = scalar_lea.vmem %s4219_s30, %s3811_s15  ;;  %s624_s24 = scalar_lea.vmem %s4220_s27, %s3811_s15 }
  0xc0   : > { %s627_s13 = scalar_lea.vmem %s4221_s19, %s3811_s15  ;;  %s630_s3 = scalar_lea.vmem %s4222_s25, %s3811_s15 }
  0xc3   : > { %v636_v0 = vld [vmem:[%s3776_s11] sm:$0xf] }
  0xc4   : > { %v637_v1 = vunpack.c.l.bf16 %v636_v0 }
  0xc6   : > { %638 = vst [vmem:[#allocation2] sm:$0xff] %v637_v1 }
  0xc7 PF: > { %v2994_v3 = vld [vmem:[%s3789_s6 + $0xac] ss:$12 sps:$4 sm:$0xff]   ;;  %v2996_v4 = vld [vmem:[%s3789_s6 + $0xa8] ss:$12 sps:$4 sm:$0xff]   ;;  %v3460_v5 = vmov 0.0   ;;  %v3461_v24 = vmov 0  }
  0xc8   : > { %2752 = vmatprep.subr.bf16.mxu1 %v3460_v5  ;;  %v2997_v6 = vld [vmem:[%s3789_s6 + $0xb0] ss:$12 sps:$4 sm:$0xff]   ;;  %v2998_v7 = vld [vmem:[%s3789_s6 + $0x94] ss:$12 sps:$4 sm:$0xff]   ;;  %830 = vmatprep.subr.bf16.mxu0 %v2994_v3  ;;  %v3001_v9 = vld [vmem:[%s3789_s6 + $0x98] ss:$12 sps:$4 sm:$0xff]  }
  0xc9   : > { %v3000_v8 = vld [vmem:[%s3789_s6 + $0x90] ss:$12 sps:$4 sm:$0xff]   ;;  %831 = vmatpush1.bf16.msra.mxu0 %v2996_v4  ;;  %2753 = vmatpush3.bf16.msra.mxu1 %v2997_v6  ;;  %v3004_v15 = vld [vmem:[%s3789_s6 + $0x78] ss:$12 sps:$4 sm:$0xff]   ;;  %v3005_v16 = vld [vmem:[%s3789_s6 + $0x80] ss:$12 sps:$4 sm:$0xff]  }
  0xca   : > { %832 = vmatprep.subr.bf16.mxu0 %v2998_v7  ;;  %2754 = vmatprep.subr.bf16.mxu1 %v3460_v5  ;;  %v3002_v14 = vld [vmem:[%s3789_s6 + $0x7c] ss:$12 sps:$4 sm:$0xff]   ;;  %v3006_v17 = vld [vmem:[%s3789_s6 + $0x64] ss:$12 sps:$4 sm:$0xff]   ;;  %v3008_v18 = vld [vmem:[%s3789_s6 + $0x60] ss:$12 sps:$4 sm:$0xff]  }
  0xcb   : > { %v3009_v19 = vld [vmem:[%s3789_s6 + $0x68] ss:$12 sps:$4 sm:$0xff]   ;;  %v3010_v20 = vld [vmem:[%s3789_s6 + $0x4c] ss:$12 sps:$4 sm:$0xff]   ;;  %v3013_v22 = vld [vmem:[%s3789_s6 + $0x50] ss:$12 sps:$4 sm:$0xff]   ;;  %862 = vmatprep.mubr.bf16.mxu0 %v3461_v24 }
  0xcc   : > { %v3012_v21 = vld [vmem:[%s3789_s6 + $0x48] ss:$12 sps:$4 sm:$0xff]   ;;  %vm3462_vm0 = vmmov 0   ;;  %v3016_v25 = vld [vmem:[%s3789_s6 + $0x30] ss:$12 sps:$4 sm:$0xff]   ;;  %vm999_vm1 = vcmask 1043456  }
  0xcd   : > { %v3835_v2 = vld [vmem:[#allocation2] sm:$0xff]  ;;  %833 = vmatpush1.bf16.msra.mxu0 %v3000_v8  ;;  %2755 = vmatpush3.bf16.msra.mxu1 %v3001_v9  ;;  %v3017_v26 = vld [vmem:[%s3789_s6 + $0x38] ss:$12 sps:$4 sm:$0xff]   ;;  %v3018_v27 = vld [vmem:[%s3789_s6 + $0x1c] ss:$12 sps:$4 sm:$0xff]   ;;  %vm936_vm2 = vcmask 261120  }
  0xce   : > { %643 = vadd.xlane.f32.xlu0 %v3835_v2  ;;  %2756 = vmatprep.subr.bf16.mxu1 %v3460_v5  ;;  %v3014_v23 = vld [vmem:[%s3789_s6 + $0x34] ss:$12 sps:$4 sm:$0xff]   ;;  %v3020_v28 = vld [vmem:[%s3789_s6 + $0x18] ss:$12 sps:$4 sm:$0xff]   ;;  %v2550_v37 = vld [vmem:[%s621_s10] ss:$0 sm:$0xff] }
  0xcf   : > { %834 = vmatprep.subr.bf16.mxu0 %v3002_v14  ;;  %2768 = vmatprep.mubr.msk.bf16.mxu1 %vm3462_vm0, %v3460_v5  ;;  %v3021_v29 = vld [vmem:[%s3789_s6 + $0x20] ss:$12 sps:$4 sm:$0xff]   ;;  %v3022_v30 = vld [vmem:[%s3789_s6 + $0x4] ss:$12 sps:$4 sm:$0xff]   ;;  %v3025_v32 = vld [vmem:[%s3789_s6 + $0x8] ss:$12 sps:$4 sm:$0xff]  }
  0xd0   : > { %v3024_v31 = vld [vmem:[%s3789_s6] ss:$12 sps:$4 sm:$0xff]   ;;  %s3463_s14 = smov 96   ;;  %s4226_s30 = scalar_lea.vmem [#allocation6], %s3770_s1  ;;  %vm983_vm3 = vcmask 64512  }
  0xd1   : > { %835 = vmatpush1.bf16.msra.mxu0 %v3004_v15  ;;  %2757 = vmatpush3.bf16.msra.mxu1 %v3005_v16  ;;  %v2551_v39 = vld [vmem:[%s624_s24] ss:$0 sm:$0xff]  ;;  %s3464_s10 = smov 64   ;;  %s3465_s16 = smov 32  }
  0xd2   : > { %2758 = vmatprep.subr.bf16.mxu1 %v3460_v5  ;;  %836 = vmatprep.subr.bf16.mxu0 %v3006_v17  ;;  %v3917_v59 = vld [vmem:[%s4226_s30] ss:$0 sm:$0xff] }
  0xd5   : > { %837 = vmatpush1.bf16.msra.mxu0 %v3008_v18  ;;  %2759 = vmatpush3.bf16.msra.mxu1 %v3009_v19 }
  0xd6   : > { %838 = vmatprep.subr.bf16.mxu0 %v3010_v20  ;;  %2760 = vmatprep.subr.bf16.mxu1 %v3460_v5 }
  0xd9   : > { %839 = vmatpush1.bf16.msra.mxu0 %v3012_v21  ;;  %2761 = vmatpush3.bf16.msra.mxu1 %v3013_v22 }
  0xda   : > { %840 = vmatprep.subr.bf16.mxu0 %v3014_v23  ;;  %2762 = vmatprep.subr.bf16.mxu1 %v3460_v5 }
  0xdd   : > { %841 = vmatpush1.bf16.msra.mxu0 %v3016_v25  ;;  %2763 = vmatpush3.bf16.msra.mxu1 %v3017_v26  ;;  %v3028_v25 = vld [vmem:[%s3795_s23 + $0x18] sm:$0xff]   ;;  %v3029_v26 = vld [vmem:[%s3795_s23 + $0x10] sm:$0xff]  }
  0xde   : > { %842 = vmatprep.subr.bf16.mxu0 %v3018_v27  ;;  %2764 = vmatprep.subr.bf16.mxu1 %v3460_v5 }
  0xe1   : > { %843 = vmatpush1.bf16.msra.mxu0 %v3020_v28  ;;  %2765 = vmatpush3.bf16.msra.mxu1 %v3021_v29 }
  0xe2   : > { %844 = vmatprep.subr.bf16.mxu0 %v3022_v30  ;;  %2766 = vmatprep.subr.bf16.mxu1 %v3460_v5 }
  0xe5   : > { %845 = vmatpush1.bf16.msra.mxu0 %v3024_v31  ;;  %2767 = vmatpush3.bf16.msra.mxu1 %v3025_v32  ;;  %v3026_v32 = vld [vmem:[%s3795_s23 + $0x8] sm:$0xff]  }
  0xe6   : > { %2778 = vmatprep.subr.bf16.mxu1 %v3460_v5  ;;  %2772 = vmatprep.subr.bf16.mxu0 %v3460_v5 }
 0x157   : > { %v644_v10 = vpop.xlane.xlu0 %643 }
 0x158   : > { %v646_v11 = vmul.f32 0.0078125, %v644_v10 }
 0x15a   : > { %v647_v12 = vsub.f32 %v3835_v2, %v646_v11 }
 0x15c   : > { %v648_v13 = vmul.f32 %v647_v12, %v647_v12 }
 0x15e   : > { %649 = vadd.xlane.f32.xlu0 %v648_v13 }
 0x1e7   : > { %v650_v33 = vpop.xlane.xlu0 %649 }
 0x1e8   : > { %v651_v34 = vmul.f32 0.0078125, %v650_v33 }
 0x1ea   : > { %v652_v35 = vadd.f32 1e-05, %v651_v34  ;;  %v3027_v34 = vld [vmem:[%s3795_s23] sm:$0xff]  }
 0x1ec   : > { %3114 = vrsqrt.f32 %v652_v35 }
 0x1f9   : > { %v3115_v36 = vpop.eup %3114 }
 0x1fa   : > { %v654_v38 = vmul.f32 %v3115_v36, %v647_v12 }
 0x1fc   : > { %v661_v40 = vmul.f32 %v2550_v37, %v654_v38 }
 0x1fe   : > { %v668_v41 = vadd.f32 %v2551_v39, %v661_v40 }
 0x200   : > { %v669_v42 = vpack.c.bf16 %v668_v41, %v668_v41 }
 0x202   : > { %863 = vmatmul.mubr.bf16.vlgmr.msra.gmra.mxu0 %v669_v42  ;;  %2769 = vmatmul.mubr.bf16.vlgmr.msra.gmra.mxu1 %v669_v42 }
 0x203   : > { %2774 = vmatprep.mubr.msk.bf16.mxu0 %vm3462_vm0, %v3460_v5  ;;  %2780 = vmatprep.mubr.msk.bf16.mxu1 %vm3462_vm0, %v3460_v5 }
 0x2c2   : > { %v864_v43 = vpop.f32.mrf.mxu0  ;;  %v905_v44 = vpop.f32.mrf.mxu1 }
 0x2c3   : > { %v3890_v45 = vpack.c.bf16 %v905_v44, %v905_v44  ;;  %v3901_v55 = vpack.c.bf16 %v864_v43, %v864_v43 }
 0x2c4   : > { %v866_v46 = vpop.f32.mrf.mxu0  ;;  %v2770_v47 = vpop.f32.mrf.mxu1 }
 0x2c5   : > { %v3892_v48 = vpack.c.bf16 %v866_v46, %v866_v46  ;;  %v1001_v49 = vsel %vm999_vm1, %v3890_v45, 0 }
 0x2c6   : > { %v868_v50 = vpop.f32.mrf.mxu0  ;;  %v908_v51 = vpop.f32.mrf.mxu1  ;;  %2779 = vmatpush3.bf16.msra.mxu1 %v1001_v49 }
 0x2c7   : > { %1048 = vrot.lane.b32.xlu1 %v3892_v48, %s3463_s14  ;;  %v941_v52 = vsel %vm936_vm2, %v3892_v48, 0  ;;  %2790 = vmatprep.subr.bf16.mxu1 %v3460_v5 }
 0x2c8   : > { %v869_v53 = vpop.f32.mrf.mxu0  ;;  %v2771_v54 = vpop.f32.mrf.mxu1  ;;  %2773 = vmatpush3.bf16.xpose.msra.mxu0 %v941_v52 }
 0x2c9   : > { %2784 = vmatprep.subr.bf16.mxu0 %v3460_v5 }
 0x2cb   : > { %1045 = vrot.lane.b32.xlu1 %v3901_v55, %s3463_s14 }
 0x2cf   : > { %2775 = vmatmul.mubr.msk.bf16.vlgmr.msra.gmra.mxu0 %vm936_vm2, %v3901_v55 }
 0x2d0   : > { %2786 = vmatprep.mubr.msk.bf16.mxu0 %vm3462_vm0, %v3460_v5 }
 0x339   : > { %v1049_v56 = vpop.permute.xlu1 %1048 }
 0x33a   : > { %v1054_v57 = vsel %vm936_vm2, %v1049_v56, 0 }
 0x33b   : > { %2785 = vmatpush3.bf16.xpose.msra.mxu0 %v1054_v57 }
 0x33c   : > { %2796 = vmatprep.subr.bf16.mxu0 %v3460_v5 }
 0x33d   : > { %v1046_v58 = vpop.permute.xlu1 %1045 }
 0x342   : > { %2787 = vmatmul.mubr.msk.bf16.vlgmr.msra.gmra.mxu0 %vm936_vm2, %v1046_v58 }
 0x343   : > { %2800 = vmatprep.mubr.msk.bf16.mxu0 %vm3462_vm0, %v3460_v5  ;;  %2797 = vmatpush3.bf16.msra.mxu0 %v3028_v25 }
 0x344   : > { %2798 = vmatprep.subr.bf16.mxu0 %v3460_v5 }
 0x347   : > { %2799 = vmatpush3.bf16.msra.mxu0 %v3029_v26 }
 0x348   : > { %2812 = vmatprep.subr.bf16.mxu0 %v3460_v5 }
 0x38f   : > { %v977_v60 = vpop.f32.mrf.mxu0 }
 0x390   : > { %v978_v61 = vadd.f32 %v3917_v59, %v977_v60 }
 0x391   : > { %v2776_v62 = vpop.f32.mrf.mxu0 }
 0x392   : > { %v984_v63 = vsel %vm983_vm3, %v978_v61, -inf }
 0x393   : > { %985 = vmax.xlane.f32.xlu0 %v984_v63  ;;  %v980_v0 = vpop.f32.mrf.mxu0 }
 0x395   : > { %v2777_v1 = vpop.f32.mrf.mxu0 }
 0x402   : > { %v1090_v3 = vpop.f32.mrf.mxu0 }
 0x403   : > { %v1091_v4 = vadd.f32 %v3917_v59, %v1090_v3 }
 0x404   : > { %v2788_v6 = vpop.f32.mrf.mxu0 }
 0x405   : > { %v1096_v7 = vsel %vm983_vm3, %v1091_v4, -inf }
 0x406   : > { %1097 = vmax.xlane.f32.xlu1 %v1096_v7  ;;  %v1093_v8 = vpop.f32.mrf.mxu0 }
 0x408   : > { %v2789_v9 = vpop.f32.mrf.mxu0 }
 0x417   : > { %1268 = vrot.lane.b32.xlu1 %v3901_v55, %s3464_s10 }
 0x41c   : > { %v986_v10 = vpop.xlane.xlu0 %985 }
 0x41d   : > { %v987_v11 = vsub.f32 %v978_v61, %v986_v10 }
 0x41f   : > { %v988_v12 = vmul.f32 1.442695, %v987_v11  ;;  %v3030_v11 = vld [vmem:[%s3795_s23 + $0x28] sm:$0xff]  }
 0x421   : > { %3116 = vpow2.f32 %v988_v12 }
 0x42e   : > { %v3117_v13 = vpop.eup %3116 }
 0x42f   : > { %v990_v14 = vsel %vm983_vm3, %v3117_v13, 0.0 }
 0x430   : > { %991 = vadd.xlane.f32.xlu0 %v990_v14 }
 0x48f   : > { %v1098_v15 = vpop.xlane.xlu1 %1097 }
 0x490   : > { %v1099_v16 = vsub.f32 %v1091_v4, %v1098_v15 }
 0x492   : > { %v1100_v17 = vmul.f32 1.442695, %v1099_v16 }
 0x493   : > { %v1269_v49 = vpop.permute.xlu1 %1268 }
 0x494   : > { %3118 = vpow2.f32 %v1100_v17  ;;  %v3031_v17 = vld [vmem:[%s3795_s23 + $0x20] sm:$0xff]  }
 0x4a1   : > { %v3119_v18 = vpop.eup %3118 }
 0x4a2   : > { %v1102_v19 = vsel %vm983_vm3, %v3119_v18, 0.0 }
 0x4a3   : > { %1103 = vadd.xlane.f32.xlu0 %v1102_v19 }
 0x4b9   : > { %v992_v20 = vpop.xlane.xlu0 %991  ;;  %1109 = vrot.lane.b32.xlu0 %v3890_v45, %s3463_s14 }
 0x4ba   : > { %3120 = vrcp.f32 %v992_v20 }
 0x4bd   : > { %1270 = vrot.lane.b32.xlu0 %v3892_v48, %s3464_s10 }
 0x4c7   : > { %v3121_v21 = vpop.eup %3120 }
 0x4c8   : > { %v994_v22 = vmul.f32 %v3121_v21, %v3117_v13 }
 0x4ca   : > { %v995_v23 = vpack.c.bf16 %v994_v22, %v994_v22 }
 0x4cc   : > { %2781 = vmatmul.mubr.msk.bf16.vlgmr.msra.gmra.mxu1 %vm983_vm3, %v995_v23 }
 0x4cd   : > { %2792 = vmatprep.mubr.msk.bf16.mxu1 %vm3462_vm0, %v3460_v5 }
 0x52c   : > { %v1104_v27 = vpop.xlane.xlu0 %1103 }
 0x52d   : > { %3122 = vrcp.f32 %v1104_v27 }
 0x530   : > { %v1110_v28 = vpop.permute.xlu0 %1109 }
 0x531   : > { %v1115_v29 = vsel %vm999_vm1, %v1110_v28, 0 }
 0x532   : > { %2791 = vmatpush3.bf16.msra.mxu1 %v1115_v29 }
 0x533   : > { %2804 = vmatprep.subr.bf16.mxu1 %v3460_v5 }
 0x534   : > { %v1271_v40 = vpop.permute.xlu0 %1270 }
 0x535   : > { %v1276_v44 = vsel %vm936_vm2, %v1271_v40, 0 }
 0x53a   : > { %v3123_v30 = vpop.eup %3122 }
 0x53b   : > { %v1106_v31 = vmul.f32 %v3123_v30, %v3119_v18 }
 0x53d   : > { %v1107_v33 = vpack.c.bf16 %v1106_v31, %v1106_v31 }
 0x53f   : > { %2793 = vmatmul.mubr.msk.bf16.vlgmr.msra.gmra.mxu1 %vm983_vm3, %v1107_v33 }
 0x540   : > { %2805 = vmatpush3.bf16.msra.mxu1 %v3026_v32  ;;  %2808 = vmatprep.mubr.msk.bf16.mxu1 %vm3462_vm0, %v3460_v5 }
 0x541   : > { %2806 = vmatprep.subr.bf16.mxu1 %v3460_v5 }
 0x544   : > { %2807 = vmatpush3.bf16.msra.mxu1 %v3027_v34 }
 0x545   : > { %2818 = vmatprep.subr.bf16.mxu1 %v3460_v5 }
 0x58c   : > { %v1037_v35 = vpop.f32.mrf.mxu1 }
 0x58d   : > { %v1043_v36 = vpack.c.bf16 %v1037_v35, %v1037_v35 }
 0x58e   : > { %v2782_v37 = vpop.f32.mrf.mxu1 }
 0x58f   : > { %2809 = vmatmul.mubr.msk.bf16.vlgmr.msra.gmra.mxu1 %vm936_vm2, %v1043_v36 }
 0x590   : > { %v1040_v38 = vpop.f32.mrf.mxu1  ;;  %2820 = vmatprep.mubr.msk.bf16.mxu1 %vm3462_vm0, %v3460_v5 }
 0x592   : > { %v2783_v39 = vpop.f32.mrf.mxu1 }
 0x5ff   : > { %v1151_v41 = vpop.f32.mrf.mxu1 }
 0x600   : > { %v1157_v42 = vpack.c.bf16 %v1151_v41, %v1151_v41 }
 0x601   : > { %v2794_v43 = vpop.f32.mrf.mxu1 }
 0x602   : > { %2801 = vmatmul.mubr.msk.bf16.vlgmr.msra.gmra.mxu0 %vm936_vm2, %v1157_v42 }
 0x603   : > { %2813 = vmatpush3.bf16.xpose.msra.mxu0 %v1276_v44  ;;  %v1154_v46 = vpop.f32.mrf.mxu1  ;;  %2814 = vmatprep.mubr.msk.bf16.mxu0 %vm3462_vm0, %v3460_v5 }
 0x604   : > { %2824 = vmatprep.subr.bf16.mxu0 %v3460_v5 }
 0x605   : > { %v2795_v47 = vpop.f32.mrf.mxu1 }
 0x606   : > { %v3033_v47 = vld [vmem:[%s3795_s23 + $0x30] sm:$0xff]  }
 0x60a   : > { %2815 = vmatmul.mubr.msk.bf16.vlgmr.msra.gmra.mxu0 %vm936_vm2, %v1269_v49 }
 0x60b   : > { %2828 = vmatprep.mubr.msk.bf16.mxu0 %vm3462_vm0, %v3460_v5  ;;  %2825 = vmatpush3.bf16.msra.mxu0 %v3030_v11  ;;  %v3046_v11 = vld [vmem:[%s3801_s5 + $0xa0] ss:$16 sps:$4 sm:$0xff]  }
 0x60c   : > { %2826 = vmatprep.subr.bf16.mxu0 %v3460_v5 }
 0x60f   : > { %2827 = vmatpush3.bf16.msra.mxu0 %v3031_v17  ;;  %v3058_v17 = vld [vmem:[%s3801_s5 + $0x60] ss:$16 sps:$4 sm:$0xff]  }
 0x610   : > { %2838 = vmatprep.subr.bf16.mxu0 %v3460_v5 }
 0x64f   : > { %v3958_v50 = vpop.f32.mrf.mxu1 }
 0x651   : > { %v2810_v51 = vpop.f32.mrf.mxu1 }
 0x653   : > { %v1265_v52 = vpop.f32.mrf.mxu1 }
 0x655   : > { %v2811_v53 = vpop.f32.mrf.mxu1 }
 0x6c2   : > { %v3960_v54 = vpop.f32.mrf.mxu0 }
 0x6c3   : > { %v1263_v36 = vadd.f32 %v3958_v50, %v3960_v54 }
 0x6c4   : > { %v2802_v56 = vpop.f32.mrf.mxu0 }
 0x6c6   : > { %v1210_v57 = vpop.f32.mrf.mxu0 }
 0x6c8   : > { %v2803_v58 = vpop.f32.mrf.mxu0 }
 0x6ca   : > { %v1312_v60 = vpop.f32.mrf.mxu0 }
 0x6cb   : > { %v1313_v61 = vadd.f32 %v3917_v59, %v1312_v60 }
 0x6cc   : > { %v2816_v62 = vpop.f32.mrf.mxu0 }
 0x6cd   : > { %v1318_v63 = vsel %vm983_vm3, %v1313_v61, -inf  ;;  %v3036_v62 = vld [vmem:[%s3801_s5 + $0xe4] ss:$16 sps:$4 sm:$0xff]  }
 0x6ce   : > { %1319 = vmax.xlane.f32.xlu0 %v1318_v63  ;;  %v1315_v0 = vpop.f32.mrf.mxu0  ;;  %v3037_v63 = vld [vmem:[%s3801_s5 + $0xe8] ss:$16 sps:$4 sm:$0xff]  }
 0x6cf   : > { %v3039_v0 = vld [vmem:[%s3801_s5 + $0xec] ss:$16 sps:$4 sm:$0xff]  }
 0x6d0   : > { %v2817_v1 = vpop.f32.mrf.mxu0 }
 0x6d1   : > { %v3042_v1 = vld [vmem:[%s3801_s5 + $0xc4] ss:$16 sps:$4 sm:$0xff]  }
 0x6e4   : > { %1330 = vrot.lane.b32.xlu0 %v3890_v45, %s3464_s10 }
 0x6e8   : > { %1435 = vrot.lane.b32.xlu0 %v3901_v55, %s3465_s16 }
 0x757   : > { %v1320_v3 = vpop.xlane.xlu0 %1319 }
 0x758   : > { %v1321_v4 = vsub.f32 %v1313_v61, %v1320_v3  ;;  %v3034_v61 = vld [vmem:[%s3801_s5 + $0xe0] ss:$16 sps:$4 sm:$0xff]   ;;  %v3043_v3 = vld [vmem:[%s3801_s5 + $0xc8] ss:$16 sps:$4 sm:$0xff]  }
 0x75a   : > { %v1322_v6 = vmul.f32 1.442695, %v1321_v4 }
 0x75b   : > { %v1331_v7 = vpop.permute.xlu0 %1330 }
 0x75c   : > { %3124 = vpow2.f32 %v1322_v6  ;;  %v1336_v8 = vsel %vm999_vm1, %v1331_v7, 0 }
 0x75d   : > { %2819 = vmatpush3.bf16.msra.mxu1 %v1336_v8 }
 0x75e   : > { %2832 = vmatprep.subr.bf16.mxu1 %v3460_v5 }
 0x769   : > { %v3125_v9 = vpop.eup %3124 }
 0x76a   : > { %v1324_v10 = vsel %vm983_vm3, %v3125_v9, 0.0 }
 0x76b   : > { %1325 = vadd.xlane.f32.xlu1 %v1324_v10  ;;  %v3051_v10 = vld [vmem:[%s3801_s5 + $0xac] ss:$16 sps:$4 sm:$0xff]  }
 0x77c   : > { %1437 = vrot.lane.b32.xlu1 %v3892_v48, %s3465_s16  ;;  %v1436_v48 = vpop.permute.xlu0 %1435 }
 0x7f4   : > { %v1326_v55 = vpop.xlane.xlu1 %1325 }
 0x7f5   : > { %3126 = vrcp.f32 %v1326_v55  ;;  %v3049_v55 = vld [vmem:[%s3801_s5 + $0xa8] ss:$16 sps:$4 sm:$0xff]  }
 0x7f8   : > { %v1438_v14 = vpop.permute.xlu1 %1437 }
 0x7f9   : > { %v1443_v16 = vsel %vm936_vm2, %v1438_v14, 0  ;;  %v3055_v14 = vld [vmem:[%s3801_s5 + $0x88] ss:$16 sps:$4 sm:$0xff]  }
 0x802   : > { %v3127_v12 = vpop.eup %3126 }
 0x803   : > { %v1328_v13 = vmul.f32 %v3127_v12, %v3125_v9  ;;  %v3048_v9 = vld [vmem:[%s3801_s5 + $0xa4] ss:$16 sps:$4 sm:$0xff]   ;;  %v3052_v12 = vld [vmem:[%s3801_s5 + $0x80] ss:$16 sps:$4 sm:$0xff]  }
 0x805   : > { %v1329_v15 = vpack.c.bf16 %v1328_v13, %v1328_v13  ;;  %v3054_v13 = vld [vmem:[%s3801_s5 + $0x84] ss:$16 sps:$4 sm:$0xff]  }
 0x807   : > { %2821 = vmatmul.mubr.msk.bf16.vlgmr.msra.gmra.mxu1 %vm983_vm3, %v1329_v15  ;;  %v3057_v15 = vld [vmem:[%s3801_s5 + $0x8c] ss:$16 sps:$4 sm:$0xff]  }
 0x808   : > { %2833 = vmatpush3.bf16.xpose.msra.mxu1 %v1443_v16  ;;  %2834 = vmatprep.mubr.msk.bf16.mxu1 %vm3462_vm0, %v3460_v5  ;;  %v3060_v16 = vld [vmem:[%s3801_s5 + $0x64] ss:$16 sps:$4 sm:$0xff]  }
 0x809   : > { %2844 = vmatprep.subr.bf16.mxu1 %v3460_v5 }
 0x80f   : > { %2835 = vmatmul.mubr.msk.bf16.vlgmr.msra.gmra.mxu1 %vm936_vm2, %v1436_v48  ;;  %v3063_v48 = vld [vmem:[%s3801_s5 + $0x6c] ss:$16 sps:$4 sm:$0xff]  }
 0x810   : > { %2848 = vmatprep.mubr.msk.bf16.mxu1 %vm3462_vm0, %v3460_v5 }
 0x8c7   : > { %v1372_v18 = vpop.f32.mrf.mxu1 }
 0x8c8   : > { %v1378_v19 = vpack.c.bf16 %v1372_v18, %v1372_v18  ;;  %v3061_v18 = vld [vmem:[%s3801_s5 + $0x68] ss:$16 sps:$4 sm:$0xff]  }
 0x8c9   : > { %v2822_v20 = vpop.f32.mrf.mxu1 }
 0x8ca   : > { %2829 = vmatmul.mubr.msk.bf16.vlgmr.msra.gmra.mxu0 %vm936_vm2, %v1378_v19  ;;  %v3066_v19 = vld [vmem:[%s3801_s5 + $0x44] ss:$16 sps:$4 sm:$0xff]   ;;  %v3069_v20 = vld [vmem:[%s3801_s5 + $0x4c] ss:$16 sps:$4 sm:$0xff]  }
 0x8cb   : > { %v1375_v21 = vpop.f32.mrf.mxu1  ;;  %2840 = vmatprep.mubr.msk.bf16.mxu0 %vm3462_vm0, %v3460_v5 }
 0x8cc   : > { %v3064_v21 = vld [vmem:[%s3801_s5 + $0x40] ss:$16 sps:$4 sm:$0xff]  }
 0x8cd   : > { %v2823_v22 = vpop.f32.mrf.mxu1 }
 0x8ce   : > { %v3067_v22 = vld [vmem:[%s3801_s5 + $0x48] ss:$16 sps:$4 sm:$0xff]  }
 0x8cf   : > { %v1479_v23 = vpop.f32.mrf.mxu1 }
 0x8d0   : > { %v1480_v25 = vadd.f32 %v3917_v59, %v1479_v23  ;;  %v3072_v23 = vld [vmem:[%s3801_s5 + $0x24] ss:$16 sps:$4 sm:$0xff]  }
 0x8d1   : > { %v2836_v26 = vpop.f32.mrf.mxu1 }
 0x8d2   : > { %v1485_v27 = vsel %vm983_vm3, %v1480_v25, -inf  ;;  %v3070_v26 = vld [vmem:[%s3801_s5 + $0x20] ss:$16 sps:$4 sm:$0xff]  }
 0x8d3   : > { %1486 = vmax.xlane.f32.xlu0 %v1485_v27  ;;  %v1482_v28 = vpop.f32.mrf.mxu1  ;;  %v3073_v27 = vld [vmem:[%s3801_s5 + $0x28] ss:$16 sps:$4 sm:$0xff]  }
 0x8d4   : > { %v3078_v28 = vld [vmem:[%s3801_s5 + $0x4] ss:$16 sps:$4 sm:$0xff]  }
 0x8d5   : > { %v2837_v29 = vpop.f32.mrf.mxu1 }
 0x8d6   : > { %v3081_v29 = vld [vmem:[%s3801_s5 + $0xc] ss:$16 sps:$4 sm:$0xff]  }
 0x8e9   : > { %1497 = vrot.lane.b32.xlu0 %v3890_v45, %s3465_s16  ;;  %v3032_v45 = vld [vmem:[%s3795_s23 + $0x38] sm:$0xff]  }
 0x8ea   : > { %2845 = vmatpush3.bf16.msra.mxu1 %v3032_v45 }
 0x8eb   : > { %2846 = vmatprep.subr.bf16.mxu1 %v3460_v5 }
 0x8ee   : > { %2847 = vmatpush3.bf16.msra.mxu1 %v3033_v47  ;;  %v3088_v47 = vld [vmem:[%s3803_s29 + $0x30] sm:$0xff]  }
 0x8ef   : > { %1864 = vmatprep.subr.bf16.mxu1 %v3039_v0  ;;  %v3102_v0 = vld [vmem:[%s3803_s29 + $0x50] sm:$0xff]  }
 0x95c   : > { %v1487_v30 = vpop.xlane.xlu0 %1486 }
 0x95d   : > { %v1488_v31 = vsub.f32 %v1480_v25, %v1487_v30  ;;  %v3075_v25 = vld [vmem:[%s3801_s5 + $0x2c] ss:$16 sps:$4 sm:$0xff]   ;;  %v3076_v30 = vld [vmem:[%s3801_s5] ss:$16 sps:$4 sm:$0xff]  }
 0x95f   : > { %v1489_v32 = vmul.f32 1.442695, %v1488_v31  ;;  %v3079_v31 = vld [vmem:[%s3801_s5 + $0x8] ss:$16 sps:$4 sm:$0xff]  }
 0x960   : > { %v1498_v33 = vpop.permute.xlu0 %1497 }
 0x961   : > { %3128 = vpow2.f32 %v1489_v32  ;;  %v1503_v34 = vsel %vm999_vm1, %v1498_v33, 0 }
 0x962   : > { %2839 = vmatpush3.bf16.msra.mxu0 %v1503_v34 }
 0x963   : > { %1823 = vmatprep.subr.bf16.mxu0 %v3036_v62  ;;  %v3100_v62 = vld [vmem:[%s3803_s29 + $0x18] sm:$0xff]  }
 0x96e   : > { %v3129_v35 = vpop.eup %3128 }
 0x96f   : > { %v1491_v59 = vsel %vm983_vm3, %v3129_v35, 0.0 }
 0x970   : > { %1492 = vadd.xlane.f32.xlu1 %v1491_v59  ;;  %v2597_v59 = vld [vmem:[%s627_s13] ss:$0 sm:$0xff] }
 0x98a   : > { %v1428_v37 = vpop.f32.mrf.mxu0 }
 0x98b   : > { %v1434_v38 = vadd.f32 %v1428_v37, %v1263_v36  ;;  %v2598_v37 = vld [vmem:[%s630_s3] ss:$0 sm:$0xff]  ;;  %s4229_s3 = sld [smem:[#allocation25_spill]] }
 0x98c   : > { %v2830_v39 = vpop.f32.mrf.mxu0 }
 0x98e   : > { %v1431_v40 = vpop.f32.mrf.mxu0 }
 0x98f   : > { %v3082_v40 = vld [vmem:[%s3803_s29 + $0x78] sm:$0xff]  }
 0x990   : > { %v2831_v41 = vpop.f32.mrf.mxu0 }
 0x991   : > { %v3083_v41 = vld [vmem:[%s3803_s29 + $0xf8] sm:$0xff]   ;;  %p2663_p11 = scmp.ne.s32.totalorder %s4229_s3, 1 }
 0x9f9   : > { %v1493_v42 = vpop.xlane.xlu1 %1492 }
 0x9fa   : > { %3130 = vrcp.f32 %v1493_v42  ;;  %v3084_v42 = vld [vmem:[%s3803_s29 + $0x38] sm:$0xff]  }
 0xa07   : > { %v3131_v43 = vpop.eup %3130 }
 0xa08   : > { %v1495_v44 = vmul.f32 %v3131_v43, %v3129_v35  ;;  %v3085_v43 = vld [vmem:[%s3803_s29 + $0xb8] sm:$0xff]  }
 0xa0a   : > { %v1496_v46 = vpack.c.bf16 %v1495_v44, %v1495_v44  ;;  %v3086_v44 = vld [vmem:[%s3803_s29 + $0x70] sm:$0xff]  }
 0xa0c   : > { %2841 = vmatmul.mubr.msk.bf16.vlgmr.msra.gmra.mxu0 %vm983_vm3, %v1496_v46  ;;  %v3087_v46 = vld [vmem:[%s3803_s29 + $0xf0] sm:$0xff]  }
 0xa0d   : > { %1855 = vmatprep.mubr.bf16.mxu0 %v3461_v24  ;;  %1824 = vmatpush1.bf16.msra.mxu0 %v3034_v61  ;;  %v3099_v61 = vld [vmem:[%s3803_s29 + $0xd8] sm:$0xff]  }
 0xa0e   : > { %1825 = vmatprep.subr.bf16.mxu0 %v3042_v1  ;;  %v3103_v1 = vld [vmem:[%s3803_s29 + $0xd0] sm:$0xff]  }
 0xacc   : > { %v1539_v49 = vpop.f32.mrf.mxu0 }
 0xacd   : > { %v1545_v50 = vpack.c.bf16 %v1539_v49, %v1539_v49  ;;  %v3089_v49 = vld [vmem:[%s3803_s29 + $0xb0] sm:$0xff]  }
 0xace   : > { %v2842_v51 = vpop.f32.mrf.mxu0 }
 0xacf   : > { %2849 = vmatmul.mubr.msk.bf16.vlgmr.msra.gmra.mxu1 %vm936_vm2, %v1545_v50  ;;  %v3090_v50 = vld [vmem:[%s3803_s29 + $0x68] sm:$0xff]  }
 0xad0   : > { %v1542_v5 = vpop.f32.mrf.mxu0  ;;  %1896 = vmatprep.mubr.bf16.mxu1 %v3461_v24  ;;  %v3045_v24 = vld [vmem:[%s3801_s5 + $0xcc] ss:$16 sps:$4 sm:$0xff]   ;;  %1865 = vmatpush1.bf16.msra.mxu1 %v3037_v63 }
 0xad1   : > { %1866 = vmatprep.subr.bf16.mxu1 %v3045_v24  ;;  %v3091_v51 = vld [vmem:[%s3803_s29 + $0xe8] sm:$0xff]   ;;  %v3101_v63 = vld [vmem:[%s3803_s29 + $0x98] sm:$0xff]   ;;  %v3104_v24 = vld [vmem:[%s3803_s29 + $0x10] sm:$0xff]  }
 0xad2   : > { %v2843_v52 = vpop.f32.mrf.mxu0  ;;  %v3092_v5 = vld [vmem:[%s3803_s29 + $0x28] sm:$0xff]  }
 0xad3   : > { %v3093_v52 = vld [vmem:[%s3803_s29 + $0xa8] sm:$0xff]  }
 0xad4   : > { %1867 = vmatpush1.bf16.msra.mxu1 %v3043_v3  ;;  %v3106_v3 = vld [vmem:[%s3803_s29 + $0x48] sm:$0xff]  }
 0xad5   : > { %1868 = vmatprep.subr.bf16.mxu1 %v3051_v10  ;;  %v3112_v10 = vld [vmem:[%s3803_s29] sm:$0xff]  }
 0xad8   : > { %1869 = vmatpush1.bf16.msra.mxu1 %v3049_v55 }
 0xad9   : > { %1870 = vmatprep.subr.bf16.mxu1 %v3057_v15 }
 0xadc   : > { %1871 = vmatpush1.bf16.msra.mxu1 %v3055_v14 }
 0xadd   : > { %1872 = vmatprep.subr.bf16.mxu1 %v3063_v48 }
 0xae0   : > { %1873 = vmatpush1.bf16.msra.mxu1 %v3061_v18 }
 0xae1   : > { %1874 = vmatprep.subr.bf16.mxu1 %v3069_v20 }
 0xae4   : > { %1875 = vmatpush1.bf16.msra.mxu1 %v3067_v22 }
 0xae5   : > { %1876 = vmatprep.subr.bf16.mxu1 %v3075_v25 }
 0xae8   : > { %1877 = vmatpush1.bf16.msra.mxu1 %v3073_v27 }
 0xae9   : > { %1878 = vmatprep.subr.bf16.mxu1 %v3081_v29 }
 0xaec   : > { %1879 = vmatpush1.bf16.msra.mxu1 %v3079_v31 }
 0xaed   : > { %2730 = vmatprep.subr.bf16.mxu1 %v3083_v41 }
 0xb8f   : > { %v1595_v53 = vpop.f32.mrf.mxu1 }
 0xb90   : > { %v1601_v54 = vadd.f32 %v1595_v53, %v1434_v38  ;;  %v3094_v53 = vld [vmem:[%s3803_s29 + $0x60] sm:$0xff]  }
 0xb91   : > { %v2850_v56 = vpop.f32.mrf.mxu1 }
 0xb92   : > { %v4004_v57 = vadd.f32 %v1601_v54, %v3835_v2  ;;  %v3040_v2 = vld [vmem:[%s3801_s5 + $0xc0] ss:$16 sps:$4 sm:$0xff]  }
 0xb93   : > { %v1598_v58 = vpop.f32.mrf.mxu1  ;;  %1826 = vmatpush1.bf16.msra.mxu0 %v3040_v2  ;;  %v3095_v54 = vld [vmem:[%s3803_s29 + $0xe0] sm:$0xff]   ;;  %v3105_v2 = vld [vmem:[%s3803_s29 + $0x90] sm:$0xff]  }
 0xb94   : > { %1605 = vadd.xlane.f32.xlu1 %v4004_v57  ;;  %1827 = vmatprep.subr.bf16.mxu0 %v3048_v9  ;;  %v3096_v56 = vld [vmem:[%s3803_s29 + $0x20] sm:$0xff]  }
 0xb95   : > { %v2851_v60 = vpop.f32.mrf.mxu1  ;;  %v3097_v58 = vld [vmem:[%s3803_s29 + $0xa0] sm:$0xff]  }
 0xb96   : > { %v3098_v60 = vld [vmem:[%s3803_s29 + $0x58] sm:$0xff]   ;;  %v3111_v9 = vld [vmem:[%s3803_s29 + $0xc0] sm:$0xff]  }
 0xb97   : > { %1828 = vmatpush1.bf16.msra.mxu0 %v3046_v11  ;;  %v3113_v11 = vld [vmem:[%s3803_s29 + $0x80] sm:$0xff]  }
 0xb98   : > { %1829 = vmatprep.subr.bf16.mxu0 %v3054_v13 }
 0xb9b   : > { %1830 = vmatpush1.bf16.msra.mxu0 %v3052_v12 }
 0xb9c   : > { %1831 = vmatprep.subr.bf16.mxu0 %v3060_v16 }
 0xb9f   : > { %1832 = vmatpush1.bf16.msra.mxu0 %v3058_v17 }
 0xba0   : > { %1833 = vmatprep.subr.bf16.mxu0 %v3066_v19 }
 0xba3   : > { %1834 = vmatpush1.bf16.msra.mxu0 %v3064_v21 }
 0xba4   : > { %1835 = vmatprep.subr.bf16.mxu0 %v3072_v23 }
 0xba7   : > { %1836 = vmatpush1.bf16.msra.mxu0 %v3070_v26 }
 0xba8   : > { %1837 = vmatprep.subr.bf16.mxu0 %v3078_v28 }
 0xbab   : > { %1838 = vmatpush1.bf16.msra.mxu0 %v3076_v30 }
 0xbac   : > { %2708 = vmatprep.subr.bf16.mxu0 %v3082_v40 }
 0xc1d   : > { %v1606_v4 = vpop.xlane.xlu1 %1605 }
 0xc1e   : > { %v1607_v6 = vmul.f32 0.0078125, %v1606_v4  ;;  %v3107_v4 = vld [vmem:[%s3803_s29 + $0xc8] sm:$0xff]  }
 0xc20   : > { %v1608_v7 = vsub.f32 %v4004_v57, %v1607_v6  ;;  %v3108_v6 = vld [vmem:[%s3803_s29 + $0x8] sm:$0xff]  }
 0xc22   : > { %v1609_v8 = vmul.f32 %v1608_v7, %v1608_v7 }
 0xc24   : > { %1610 = vadd.xlane.f32.xlu1 %v1609_v8  ;;  %v3110_v8 = vld [vmem:[%s3803_s29 + $0x40] sm:$0xff]  }
 0xcad   : > { %v1611_v32 = vpop.xlane.xlu1 %1610 }
 0xcae   : > { %v1612_v33 = vmul.f32 0.0078125, %v1611_v32 }
 0xcb0   : > { %v1613_v34 = vadd.f32 1e-05, %v1612_v33 }
 0xcb2   : > { %3132 = vrsqrt.f32 %v1613_v34 }
 0xcbf   : > { %v3133_v35 = vpop.eup %3132 }
 0xcc0   : > { %v1615_v36 = vmul.f32 %v3133_v35, %v1608_v7  ;;  %v3109_v7 = vld [vmem:[%s3803_s29 + $0x88] sm:$0xff]  }
 0xcc2   : > { %v1622_v38 = vmul.f32 %v2597_v59, %v1615_v36 }
 0xcc4   : > { %v1629_v39 = vadd.f32 %v2598_v37, %v1622_v38 }
 0xcc6   : > { %v1630_v45 = vpack.c.bf16 %v1629_v39, %v1629_v39 }
 0xcc8   : > { %1856 = vmatmul.mubr.bf16.vlgmr.msra.gmra.mxu0 %v1630_v45  ;;  %1897 = vmatmul.mubr.bf16.vlgmr.msra.gmra.mxu1 %v1630_v45 }
 0xcc9   : > { %2709 = vmatpush3.bf16.msra.mxu0 %v3084_v42  ;;  %2731 = vmatpush3.bf16.msra.mxu1 %v3085_v43 }
 0xcca   : > { %2710 = vmatprep.subr.bf16.mxu0 %v3086_v44  ;;  %2732 = vmatprep.subr.bf16.mxu1 %v3087_v46 }
 0xccd   : > { %2711 = vmatpush3.bf16.msra.mxu0 %v3088_v47  ;;  %2733 = vmatpush3.bf16.msra.mxu1 %v3089_v49 }
 0xcce   : > { %2712 = vmatprep.subr.bf16.mxu0 %v3090_v50  ;;  %2734 = vmatprep.subr.bf16.mxu1 %v3091_v51 }
 0xcd1   : > { %2713 = vmatpush3.bf16.msra.mxu0 %v3092_v5  ;;  %2735 = vmatpush3.bf16.msra.mxu1 %v3093_v52 }
 0xcd2   : > { %2714 = vmatprep.subr.bf16.mxu0 %v3094_v53  ;;  %2736 = vmatprep.subr.bf16.mxu1 %v3095_v54 }
 0xcd5   : > { %2715 = vmatpush3.bf16.msra.mxu0 %v3096_v56  ;;  %2737 = vmatpush3.bf16.msra.mxu1 %v3097_v58 }
 0xcd6   : > { %2716 = vmatprep.subr.bf16.mxu0 %v3098_v60  ;;  %2738 = vmatprep.subr.bf16.mxu1 %v3099_v61 }
 0xcd9   : > { %2717 = vmatpush3.bf16.msra.mxu0 %v3100_v62  ;;  %2739 = vmatpush3.bf16.msra.mxu1 %v3101_v63 }
 0xcda   : > { %2718 = vmatprep.subr.bf16.mxu0 %v3102_v0  ;;  %2740 = vmatprep.subr.bf16.mxu1 %v3103_v1 }
 0xcdd   : > { %2719 = vmatpush3.bf16.msra.mxu0 %v3104_v24  ;;  %2741 = vmatpush3.bf16.msra.mxu1 %v3105_v2 }
 0xcde   : > { %2720 = vmatprep.subr.bf16.mxu0 %v3106_v3  ;;  %2742 = vmatprep.subr.bf16.mxu1 %v3107_v4 }
 0xce1   : > { %2721 = vmatpush3.bf16.msra.mxu0 %v3108_v6  ;;  %2743 = vmatpush3.bf16.msra.mxu1 %v3109_v7 }
 0xce2   : > { %2722 = vmatprep.subr.bf16.mxu0 %v3110_v8  ;;  %2744 = vmatprep.subr.bf16.mxu1 %v3111_v9 }
 0xce5   : > { %2723 = vmatpush3.bf16.msra.mxu0 %v3112_v10  ;;  %2745 = vmatpush3.bf16.msra.mxu1 %v3113_v11 }
 0xd88   : > { %v1857_v55 = vpop.f32.mrf.mxu0  ;;  %v1898_v12 = vpop.f32.mrf.mxu1 }
 0xd89   : > { %v1909_v13 = vmul.f32 0.044715, %v1857_v55  ;;  %v1911_v14 = vmul.f32 0.044715, %v1898_v12  ;;  %v1905_v41 = vmul.f32 0.5, %v1857_v55  ;;  %v1907_v44 = vmul.f32 0.5, %v1898_v12 }
 0xd8a   : > { %v1859_v15 = vpop.f32.mrf.mxu0  ;;  %v1900_v16 = vpop.f32.mrf.mxu1 }
 0xd8b   : > { %v1913_v48 = vmul.f32 %v1909_v13, %v1857_v55  ;;  %v1915_v17 = vmul.f32 %v1911_v14, %v1898_v12  ;;  %v1910_v18 = vmul.f32 0.044715, %v1859_v15  ;;  %v1912_v19 = vmul.f32 0.044715, %v1900_v16 }
 0xd8c   : > { %v1861_v20 = vpop.f32.mrf.mxu0  ;;  %v1902_v21 = vpop.f32.mrf.mxu1  ;;  %v1906_v46 = vmul.f32 0.5, %v1859_v15  ;;  %v1908_v49 = vmul.f32 0.5, %v1900_v16 }
 0xd8d   : > { %v1917_v22 = vmul.f32 %v1913_v48, %v1857_v55  ;;  %v1919_v23 = vmul.f32 %v1915_v17, %v1898_v12  ;;  %v1914_v25 = vmul.f32 %v1910_v18, %v1859_v15  ;;  %v1916_v26 = vmul.f32 %v1912_v19, %v1900_v16 }
 0xd8e   : > { %v1862_v27 = vpop.f32.mrf.mxu0  ;;  %v1903_v28 = vpop.f32.mrf.mxu1 }
 0xd8f   : > { %v1921_v29 = vadd.f32 %v1917_v22, %v1857_v55  ;;  %v1923_v30 = vadd.f32 %v1919_v23, %v1898_v12  ;;  %v1918_v31 = vmul.f32 %v1914_v25, %v1859_v15  ;;  %v1920_v32 = vmul.f32 %v1916_v26, %v1900_v16 }
 0xd91   : > { %v1925_v33 = vmul.f32 0.7978846, %v1921_v29  ;;  %v1927_v34 = vmul.f32 0.7978846, %v1923_v30  ;;  %v1922_v35 = vadd.f32 %v1918_v31, %v1859_v15  ;;  %v1924_v59 = vadd.f32 %v1920_v32, %v1900_v16 }
 0xd93   : > { %3134 = vtanh.f32 %v1925_v33  ;;  %v1926_v36 = vmul.f32 0.7978846, %v1922_v35  ;;  %v1928_v37 = vmul.f32 0.7978846, %v1924_v59 }
 0xd94   : > { %3136 = vtanh.f32 %v1927_v34 }
 0xd95   : > { %3138 = vtanh.f32 %v1926_v36 }
 0xd96   : > { %3140 = vtanh.f32 %v1928_v37 }
 0xda0   : > { %v3135_v38 = vpop.eup %3134 }
 0xda1   : > { %v3137_v39 = vpop.eup %3136  ;;  %v1933_v45 = vadd.f32 1.0, %v3135_v38 }
 0xda2   : > { %v3139_v40 = vpop.eup %3138  ;;  %v1935_v42 = vadd.f32 1.0, %v3137_v39 }
 0xda3   : > { %v3141_v43 = vpop.eup %3140  ;;  %v1934_v47 = vadd.f32 1.0, %v3139_v40  ;;  %v1937_v51 = vmul.f32 %v1933_v45, %v1905_v41 }
 0xda4   : > { %v1936_v50 = vadd.f32 1.0, %v3141_v43  ;;  %v1939_v52 = vmul.f32 %v1935_v42, %v1907_v44 }
 0xda5   : > { %v1938_v5 = vmul.f32 %v1934_v47, %v1906_v46  ;;  %v1941_v58 = vpack.c.bf16 %v1937_v51, %v1937_v51 }
 0xda6   : > { %v1940_v53 = vmul.f32 %v1936_v50, %v1908_v49  ;;  %v1943_v60 = vpack.c.bf16 %v1939_v52, %v1939_v52 }
 0xda7   : > { %v1942_v54 = vpack.c.bf16 %v1938_v5, %v1938_v5 }
 0xda8   : > { %v1944_v56 = vpack.c.bf16 %v1940_v53, %v1940_v53 }
 0xda9   : > { %2233 = vmatprep.mubr.bf16.mxu0 %v1942_v54 }
 0xdaa   : > { %2273 = vmatprep.mubr.bf16.mxu1 %v1944_v56  ;;  %2234 = vmatmul.mubr.bf16.vlgmr.msra.gmra.mxu0 %v1941_v58 }
 0xdab   : > { %2274 = vmatmul.mubr.bf16.vlgmr.msra.gmra.mxu1 %v1943_v60 }
 0xe6a   : > { %v2724_v61 = vpop.f32.mrf.mxu0 }
 0xe6b   : > { %v2746_v62 = vpop.f32.mrf.mxu1 }
 0xe6c   : > { %v2725_v63 = vpop.f32.mrf.mxu0 }
 0xe6d   : > { %v2726_v0 = vadd.f32 %v2725_v63, %v2724_v61  ;;  %v2747_v1 = vpop.f32.mrf.mxu1 }
 0xe6e   : > { %v2748_v24 = vadd.f32 %v2747_v1, %v2746_v62  ;;  %v2727_v2 = vpop.f32.mrf.mxu0 }
 0xe6f   : > { %v2749_v3 = vpop.f32.mrf.mxu1 }
 0xe70   : > { %v2276_v4 = vadd.f32 %v2748_v24, %v2726_v0  ;;  %v2728_v6 = vpop.f32.mrf.mxu0  ;;  %2286 = sbr.rel (%p2663_p11) target bundleno = 3704 (0xe78), region = 92 }
 0xe71   : > { %v2750_v7 = vpop.f32.mrf.mxu1 }
 0xe72   : > { %v2281_v8 = vadd.f32 %v2276_v4, %v4004_v57 }
 0xe74   : > { %2282 = vst [vmem:[#allocation2] sm:$0xff] %v2281_v8 }
 0xe75   : > { %v2287_v9 = vpack.c.bf16 %v2281_v8, %v2281_v8 }
 0xe77   : > { %2288 = vst [vmem:[%s3831_s4] sm:$0xf] %v2287_v9 }
 0xe78 PF: > { %s4230_s29 = sld [smem:[#allocation26_spill]]  ;;  %s2303_s0 = sshll.u32 %s3831_s4, 4  ;;  %s2304_s0 = int_to_ptr.vmem [resolvable:$true] %s2303_s0 }
 0xe79   : > { %s4232_s12 = sld [smem:[#allocation44_spill]]  ;;  %s2290_s11 = scalar_lea.sflag [#allocation5], %s3770_s1 }
 0xe7a   : > { %s3310_s25 = scalar_lea.vmem %s2304_s0, 64  ;;  %s3466_s6 = smov [#allocation14]  }
 0xe7b   : > { %p3311_p5 = scmp.ne.s32.totalorder %s2304_s0, %s3310_s25  ;;  %s3314_s28 = sshll.u32 %s3466_s6, 4  ;;  %s3315_s28 = int_to_ptr.vmem [resolvable:$false] %s3314_s28 }
 0xe7c   : > { %s3316_s20 = scalar_lea.vmem %s3315_s28, 128  ;;  %p3317_p10 = scmp.lt.s32.totalorder %s2304_s0, %s3315_s28 }
 0xe7d   : > { %p3312_p2 = pnand %p3311_p5, %p3645_p7  ;;  %p3318_p6 = scmp.lt.s32.totalorder %s3316_s20, %s3310_s25 }
 0xe7e   : > { %s2665_s18 = sshll.u32 %s4230_s29, 6 }
 0xe7f   : > { %s2301_s7 = scalar_lea.hbm %s4232_s12, %s2665_s18  ;;  %p3313_p8 = pneg %p3312_p2 }
 0xe80   : > { %p3319_p9 = por %p3318_p6, %p3317_p10 }
 0xe82   : > { %p3320_p1 = pnand %p3319_p9, %p3313_p8 }
 0xe84   : > { %3323 = shalt.err (!%p3320_p1)
}
 0xe85   : > { %s3324_s14 = scalar_lea.hbm %s2301_s7, 64  ;;  %s3328_s30 = scalar_lea.hbm %s4232_s12, 128 }
 0xe86   : > { %p3325_p12 = scmp.ne.s32.totalorder %s2301_s7, %s3324_s14  ;;  %p3329_p3 = scmp.lt.s32.totalorder %s2301_s7, %s4232_s12 }
 0xe87   : > { %p3330_p13 = scmp.lt.s32.totalorder %s3328_s30, %s3324_s14 }
 0xe88   : > { %p3326_p0 = pnand %p3325_p12, %p3645_p7 }
 0xe89   : > { %p3331_p11 = por %p3330_p13, %p3329_p3 }
 0xe8a   : > { %p3327_p4 = pneg %p3326_p0 }
 0xe8c   : > { %p3332_p5 = pnand %p3331_p11, %p3327_p4 }
 0xe8e   : > { %3335 = shalt.err (!%p3332_p5)
}
 0xe8f   : > { %2867 = dma.vmem_to_hbm [thread:$0]  (%p3645_p7), %s2304_s0, 64, %s2301_s7, %s2290_s11  }
 0xe90 PF: > { %s4233_s23 = sld [smem:[#allocation27_spill]] }
 0xe91   : > { %s4234_s26 = sld [smem:[#allocation23_spill]] }
 0xe92   : > { %s4235_s27 = sld [smem:[#allocation35_spill]] }
 0xe96   : > { %p2893_p2 = scmp.ge.s32.totalorder %s4233_s23, 2 }
 0xe97   : > { %s2315_s5 = sand.u32 1, %s4234_s26  }
 0xe98   : > { %p4236_p8 = scmp.ne.s32.totalorder %s4235_s27, 0  ;;  %s2316_s24 = scalar_lea.sflag [#allocation5], %s2315_s5 }
 0xe9a   : > { %p2889_p10 = pnand %p2893_p2, %p4236_p8 }
 0xe9c   : > { %p2890_p6 = pneg %p2889_p10 }
 0xe9e   : > { %3401 = dma.done.wait (%p2890_p6), %s2316_s24, 64  }
 0xe9f   : > { %3403 = vsyncadd (%p2890_p6), %s2316_s24, 4294967232  ;;  %s35_s23 = sadd.s32 1, %s4233_s23   ;;  %s4237_s13 = sld [smem:[#allocation21_spill]] }
 0xea0   : > { %p32_p9 = scmp.ge.s32.totalorder %s35_s23, 6   ;;  %s4238_s14 = sld [smem:[#allocation22_spill]] }
 0xea1   : > { %s4239_s15 = sld [smem:[#allocation31_spill]]  ;;  %s4244_s16 = smov %s3422_s17 }
 0xea2   : > { %s4240_s2 = sld [smem:[#allocation24_spill]]  ;;  %s4246_s19 = smov %s3438_s21 }
 0xea3   : > { %s4241_s18 = sld [smem:[#allocation32_spill]]  ;;  %s4247_s20 = smov %s3442_s22 }
 0xea4   : > { %s4242_s3 = sld [smem:[#allocation29_spill]] }
 0xea5   : > { %s4243_s29 = sld [smem:[#allocation30_spill]] }
 0xea7   :  { %34 = sbr.rel (!%p32_p9) target bundleno = 25 (0x19), region = 186 }
 0xea8   : > { %s4245_s17 = smov %s4240_s2 }
 0xeaa   : > { %s4248_s21 = smov %s4242_s3 }
 0xeab   : > { %s4249_s22 = smov %s4243_s29 }
 0xeac   :  { %2321 = vsyncpa [#allocation4], 1 }
 0xead   :  { %2323 = vsyncpa [#allocation4 + $0x1], 1 }
 0xeae   :  { %2324 = vsyncpa [#allocation7], 1 }
 0xeaf   :  { %2326 = vsyncpa [#allocation7 + $0x1], 1 }
 0xeb0   :  { %2327 = vsyncpa [#allocation10], 1 }
 0xeb1   :  { %2329 = vsyncpa [#allocation10 + $0x1], 1 }
 0xeb2   :  { %2330 = vsyncpa [#allocation13], 1 }
 0xeb3   :  { %2332 = vsyncpa [#allocation13 + $0x1], 1 }
 0xeb4   :  { %2333 = vsyncpa [#allocation5], 1 }
 0xeb5   :  { %2335 = vsyncpa [#allocation5 + $0x1], 1 }

</bundles_post_ra>
